<compile_context>
chip_gen: v5e
topology: v5e:2x2
jax: 0.10.0
libtpu: 0.0.40
codegen_flags: <defaults>
</compile_context>

<pallas_src>
import functools

import jax
import jax.numpy as jnp
import numpy as np
from jax import lax
from jax.experimental import pallas as pl
from jax.experimental.pallas import tpu as pltpu

EPS = 1e-5
_PAD = 128          # lane padding on each side of the flattened spatial axis


def _tap_masks(n, h, w):
    """(10, N*H*W) f32 constant: rows 0..8 = validity of tap (ky, kx) under
    pad=1; row 9 = stride-2 (even-row, even-col) selection used for BN2."""
    idx = np.arange(n * h * w)
    hh = (idx // w) % h
    ww = idx % w
    rows = []
    for ky in range(3):
        for kx in range(3):
            dy, dx = ky - 1, kx - 1
            rows.append((hh + dy >= 0) & (hh + dy < h) &
                        (ww + dx >= 0) & (ww + dx < w))
    rows.append((hh % 2 == 0) & (ww % 2 == 0))
    return jnp.asarray(np.stack(rows).astype(np.float32))


def _net_fused_kernel(x_ref, mk_ref, w1_ref, g1_ref, b1_ref,
                      w2_ref, g2_ref, b2_ref, o_ref, xp_ref, y1p_ref,
                      *, deltas):
    cin, m = x_ref.shape                     # (3, N*H*W)
    c1 = w1_ref.shape[0]                     # 6
    c2 = w2_ref.shape[0]                     # 6
    half = (xp_ref.shape[1] - m) // 2        # == _PAD

    mk = mk_ref[...]                         # (10, M) tap / selection masks
    w1 = w1_ref[...]                         # (6, 27)
    w2 = w2_ref[...]                         # (6, 54)

    # ---------------- stage 1: conv1 (3x3, s=1, p=1) + BN1 ----------------
    xp_ref[...] = jnp.zeros(xp_ref.shape, xp_ref.dtype)
    xp_ref[:, half:half + m] = x_ref[...]
    xp = xp_ref[...]                         # (3, M + 2*PAD), zero halo

    acc1 = jnp.zeros((c1, m), jnp.float32)
    for t, d in enumerate(deltas):           # 9 taps -> 9 small MXU matmuls
        xs = xp[:, half + d:half + d + m] * mk[t:t + 1, :]
        acc1 = acc1 + jnp.dot(w1[:, t * cin:(t + 1) * cin], xs,
                              preferred_element_type=jnp.float32)

    inv_m = 1.0 / float(m)                   # one-pass batch moments
    mu1 = jnp.sum(acc1, axis=1, keepdims=True) * inv_m
    var1 = jnp.sum(acc1 * acc1, axis=1, keepdims=True) * inv_m - mu1 * mu1
    y1 = (acc1 - mu1) * (lax.rsqrt(var1 + EPS) * g1_ref[...]) + b1_ref[...]

    # ------------- stage 2: conv2 (3x3, s=2, p=1) + BN2 -------------------
    # Dense stride-1 evaluation; stats and final result only use the
    # even-row/even-col columns (mask row 9); wrapper slices them out.
    y1p_ref[...] = jnp.zeros(y1p_ref.shape, y1p_ref.dtype)
    y1p_ref[:, half:half + m] = y1
    yp = y1p_ref[...]                        # (6, M + 2*PAD), zero halo

    acc2 = jnp.zeros((c2, m), jnp.float32)
    for t, d in enumerate(deltas):
        ys = yp[:, half + d:half + d + m] * mk[t:t + 1, :]
        acc2 = acc2 + jnp.dot(w2[:, t * c1:(t + 1) * c1], ys,
                              preferred_element_type=jnp.float32)

    sel = mk[9:10, :]                                       # (1, M)
    cnt = jnp.sum(sel, axis=1, keepdims=True)               # == N*Ho*Wo
    mu2 = jnp.sum(acc2 * sel, axis=1, keepdims=True) / cnt
    var2 = jnp.sum(acc2 * acc2 * sel, axis=1, keepdims=True) / cnt - mu2 * mu2
    o_ref[...] = (acc2 - mu2) * (lax.rsqrt(var2 + EPS) * g2_ref[...]) + b2_ref[...]


def _net_forward_impl(x_nchw, params):
    """Pallas implementation of Net.forward. Input NCHW, output NCHW."""
    w1, g1, b1, w2, g2, b2 = params
    n, cin, h, w = x_nchw.shape
    c1, c2 = w1.shape[-1], w2.shape[-1]
    m = n * h * w

    # lane-dense (C, N*H*W) activation layout; column m = (n*H + h)*W + w
    xflat = jnp.transpose(x_nchw, (1, 0, 2, 3)).reshape(cin, m).astype(jnp.float32)

    # (Cout, 9*Cin) weight matrices; column index = (ky*3 + kx)*Cin + ci (HWIO)
    w1m = w1.astype(jnp.float32).reshape(9 * cin, c1).T
    w2m = w2.astype(jnp.float32).reshape(9 * c1, c2).T
    g1c = g1.astype(jnp.float32).reshape(c1, 1)
    b1c = b1.astype(jnp.float32).reshape(c1, 1)
    g2c = g2.astype(jnp.float32).reshape(c2, 1)
    b2c = b2.astype(jnp.float32).reshape(c2, 1)

    masks = _tap_masks(n, h, w)                              # constant (10, M)
    deltas = tuple((ky - 1) * w + (kx - 1)
                   for ky in range(3) for kx in range(3))    # flat tap shifts

    out_flat = pl.pallas_call(
        functools.partial(_net_fused_kernel, deltas=deltas),
        out_shape=jax.ShapeDtypeStruct((c2, m), jnp.float32),
        in_specs=[pl.BlockSpec(memory_space=pltpu.MemorySpace.VMEM)] * 8,
        out_specs=pl.BlockSpec(memory_space=pltpu.MemorySpace.VMEM),
        scratch_shapes=[
            pltpu.VMEM((cin, m + 2 * _PAD), jnp.float32),    # padded x
            pltpu.VMEM((c1, m + 2 * _PAD), jnp.float32),     # padded BN1 out
        ],
    )(xflat, masks, w1m, g1c, b1c, w2m, g2c, b2c)

    # stride-2 decimation + back to NCHW (tiny glue on a 12 KiB tensor)
    y = out_flat.reshape(c2, n, h, w)[:, :, ::2, ::2]
    return jnp.transpose(y, (1, 0, 2, 3))


net_forward = jax.jit(_net_forward_impl)


# ------------------------- pure-JAX reference -------------------------
def _bn_ref(y, g, b):
    mu = jnp.mean(y, axis=(0, 1, 2), keepdims=True)
    var = jnp.mean((y - mu) ** 2, axis=(0, 1, 2), keepdims=True)
    return (y - mu) * lax.rsqrt(var + EPS) * g.reshape(1, 1, 1, -1) + b.reshape(1, 1, 1, -1)


def ref_forward(x_nchw, params):
    w1, g1, b1, w2, g2, b2 = params
    x = jnp.transpose(x_nchw, (0, 2, 3, 1)).astype(jnp.float32)
    dn1 = lax.conv_dimension_numbers(x.shape, w1.shape, ('NHWC', 'HWIO', 'NHWC'))
    y = lax.conv_general_dilated(x, w1, (1, 1), [(1, 1), (1, 1)], dimension_numbers=dn1)
    y = _bn_ref(y, g1, b1)
    dn2 = lax.conv_dimension_numbers(y.shape, w2.shape, ('NHWC', 'HWIO', 'NHWC'))
    y = lax.conv_general_dilated(y, w2, (2, 2), [(1, 1), (1, 1)], dimension_numbers=dn2)
    y = _bn_ref(y, g2, b2)
    return jnp.transpose(y, (0, 3, 1, 2))


if __name__ == "__main__":
    key = jax.random.PRNGKey(0)
    kx, kw1, kg1, kb1, kw2, kg2, kb2 = jax.random.split(key, 7)

    # PyTorch-style NCHW input; 3 input channels as required by Conv2d(3, 6, ...)
    x = jax.random.normal(kx, (2, 3, 16, 16), jnp.float32)

    # Deterministic parameter init (shapes from Net.__init__), HWIO conv weights.
    w1 = 0.2 * jax.random.normal(kw1, (3, 3, 3, 6), jnp.float32)
    g1 = 1.0 + 0.1 * jax.random.normal(kg1, (6,), jnp.float32)
    b1 = 0.1 * jax.random.normal(kb1, (6,), jnp.float32)
    w2 = 0.2 * jax.random.normal(kw2, (3, 3, 6, 6), jnp.float32)
    g2 = 1.0 + 0.1 * jax.random.normal(kg2, (6,), jnp.float32)
    b2 = 0.1 * jax.random.normal(kb2, (6,), jnp.float32)
    params = (w1, g1, b1, w2, g2, b2)

    out = jax.block_until_ready(net_forward(x, params))
    ref = jax.block_until_ready(ref_forward(x, params))

    assert out.shape == (2, 6, 8, 8), out.shape
    np.testing.assert_allclose(np.asarray(out), np.asarray(ref), rtol=2e-3, atol=2e-3)
    print("KERNEL_OK")
</pallas_src>

<mosaic_0001>
module attributes {stable_mosaic.version = 11 : i64} {
  func.func @_net_fused_kernel(%arg0: memref<3x512xf32, #tpu.memory_space<vmem>>, %arg1: memref<10x512xf32, #tpu.memory_space<vmem>>, %arg2: memref<6x27xf32, #tpu.memory_space<vmem>>, %arg3: memref<6x1xf32, #tpu.memory_space<vmem>>, %arg4: memref<6x1xf32, #tpu.memory_space<vmem>>, %arg5: memref<6x54xf32, #tpu.memory_space<vmem>>, %arg6: memref<6x1xf32, #tpu.memory_space<vmem>>, %arg7: memref<6x1xf32, #tpu.memory_space<vmem>>, %arg8: memref<6x512xf32, #tpu.memory_space<vmem>>, %arg9: memref<3x768xf32, #tpu.memory_space<vmem>>, %arg10: memref<6x768xf32, #tpu.memory_space<vmem>>) attributes {dimension_semantics = [], scalar_prefetch = 0 : i64, scratch_operands = 2 : i64, tpu.core_type = #tpu.core_type<tc>} {
    %c0 = arith.constant 0 : index
    %c0_0 = arith.constant 0 : index
    %0 = vector.load %arg1[%c0, %c0_0] : memref<10x512xf32, #tpu.memory_space<vmem>>, vector<10x512xf32>
    %c0_1 = arith.constant 0 : index
    %c0_2 = arith.constant 0 : index
    %1 = vector.load %arg2[%c0_1, %c0_2] : memref<6x27xf32, #tpu.memory_space<vmem>>, vector<6x27xf32>
    %c0_3 = arith.constant 0 : index
    %c0_4 = arith.constant 0 : index
    %2 = vector.load %arg5[%c0_3, %c0_4] : memref<6x54xf32, #tpu.memory_space<vmem>>, vector<6x54xf32>
    %cst = arith.constant 0.000000e+00 : f32
    %3 = vector.broadcast %cst : f32 to vector<3x768xf32>
    %c0_5 = arith.constant 0 : index
    %c0_6 = arith.constant 0 : index
    %4 = vector.load %arg9[%c0_5, %c0_6] : memref<3x768xf32, #tpu.memory_space<vmem>>, vector<3x768xf32>
    tpu.vector_store %arg9[%c0_5, %c0_6], %3 {strides = array<i32>} : memref<3x768xf32, #tpu.memory_space<vmem>>, vector<3x768xf32>,
    %c0_7 = arith.constant 0 : index
    %c0_8 = arith.constant 0 : index
    %5 = vector.load %arg0[%c0_7, %c0_8] : memref<3x512xf32, #tpu.memory_space<vmem>>, vector<3x512xf32>
    %c0_9 = arith.constant 0 : index
    %c128 = arith.constant 128 : index
    %6 = vector.load %arg9[%c0_9, %c128] : memref<3x768xf32, #tpu.memory_space<vmem>>, vector<3x512xf32>
    tpu.vector_store %arg9[%c0_9, %c128], %5 {strides = array<i32>} : memref<3x768xf32, #tpu.memory_space<vmem>>, vector<3x512xf32>,
    %c0_10 = arith.constant 0 : index
    %c0_11 = arith.constant 0 : index
    %7 = vector.load %arg9[%c0_10, %c0_11] : memref<3x768xf32, #tpu.memory_space<vmem>>, vector<3x768xf32>
    %cst_12 = arith.constant 0.000000e+00 : f32
    %8 = vector.broadcast %cst_12 : f32 to vector<6x512xf32>
    %9 = vector.extract_strided_slice %7 {offsets = [0, 111], sizes = [3, 512], strides = [1, 1]} : vector<3x768xf32> to vector<3x512xf32>
    %10 = vector.extract_strided_slice %0 {offsets = [0, 0], sizes = [1, 512], strides = [1, 1]} : vector<10x512xf32> to vector<1x512xf32>
    %11 = vector.broadcast %10 : vector<1x512xf32> to vector<3x512xf32>
    %12 = arith.mulf %9, %11 : vector<3x512xf32>
    %13 = vector.extract_strided_slice %1 {offsets = [0, 0], sizes = [6, 3], strides = [1, 1]} : vector<6x27xf32> to vector<6x3xf32>
    %cst_13 = arith.constant dense<0.000000e+00> : vector<6x512xf32>
    %14 = tpu.matmul %13, %12, %cst_13 {dimension_numbers = #tpu.dot_dimension_numbers<[1], [0], [0], [1], [0, 0, 1, 1], [], []>} : vector<6x3xf32>, vector<3x512xf32>, vector<6x512xf32> -> vector<6x512xf32>
    %15 = arith.addf %8, %14 : vector<6x512xf32>
    %16 = vector.extract_strided_slice %7 {offsets = [0, 112], sizes = [3, 512], strides = [1, 1]} : vector<3x768xf32> to vector<3x512xf32>
    %17 = vector.extract_strided_slice %0 {offsets = [1, 0], sizes = [1, 512], strides = [1, 1]} : vector<10x512xf32> to vector<1x512xf32>
    %18 = vector.broadcast %17 : vector<1x512xf32> to vector<3x512xf32>
    %19 = arith.mulf %16, %18 : vector<3x512xf32>
    %20 = vector.extract_strided_slice %1 {offsets = [0, 3], sizes = [6, 3], strides = [1, 1]} : vector<6x27xf32> to vector<6x3xf32>
    %cst_14 = arith.constant dense<0.000000e+00> : vector<6x512xf32>
    %21 = tpu.matmul %20, %19, %cst_14 {dimension_numbers = #tpu.dot_dimension_numbers<[1], [0], [0], [1], [0, 0, 1, 1], [], []>} : vector<6x3xf32>, vector<3x512xf32>, vector<6x512xf32> -> vector<6x512xf32>
    %22 = arith.addf %15, %21 : vector<6x512xf32>
    %23 = vector.extract_strided_slice %7 {offsets = [0, 113], sizes = [3, 512], strides = [1, 1]} : vector<3x768xf32> to vector<3x512xf32>
    %24 = vector.extract_strided_slice %0 {offsets = [2, 0], sizes = [1, 512], strides = [1, 1]} : vector<10x512xf32> to vector<1x512xf32>
    %25 = vector.broadcast %24 : vector<1x512xf32> to vector<3x512xf32>
    %26 = arith.mulf %23, %25 : vector<3x512xf32>
    %27 = vector.extract_strided_slice %1 {offsets = [0, 6], sizes = [6, 3], strides = [1, 1]} : vector<6x27xf32> to vector<6x3xf32>
    %cst_15 = arith.constant dense<0.000000e+00> : vector<6x512xf32>
    %28 = tpu.matmul %27, %26, %cst_15 {dimension_numbers = #tpu.dot_dimension_numbers<[1], [0], [0], [1], [0, 0, 1, 1], [], []>} : vector<6x3xf32>, vector<3x512xf32>, vector<6x512xf32> -> vector<6x512xf32>
    %29 = arith.addf %22, %28 : vector<6x512xf32>
    %30 = vector.extract_strided_slice %7 {offsets = [0, 127], sizes = [3, 512], strides = [1, 1]} : vector<3x768xf32> to vector<3x512xf32>
    %31 = vector.extract_strided_slice %0 {offsets = [3, 0], sizes = [1, 512], strides = [1, 1]} : vector<10x512xf32> to vector<1x512xf32>
    %32 = vector.broadcast %31 : vector<1x512xf32> to vector<3x512xf32>
    %33 = arith.mulf %30, %32 : vector<3x512xf32>
    %34 = vector.extract_strided_slice %1 {offsets = [0, 9], sizes = [6, 3], strides = [1, 1]} : vector<6x27xf32> to vector<6x3xf32>
    %cst_16 = arith.constant dense<0.000000e+00> : vector<6x512xf32>
    %35 = tpu.matmul %34, %33, %cst_16 {dimension_numbers = #tpu.dot_dimension_numbers<[1], [0], [0], [1], [0, 0, 1, 1], [], []>} : vector<6x3xf32>, vector<3x512xf32>, vector<6x512xf32> -> vector<6x512xf32>
    %36 = arith.addf %29, %35 : vector<6x512xf32>
    %37 = vector.extract_strided_slice %7 {offsets = [0, 128], sizes = [3, 512], strides = [1, 1]} : vector<3x768xf32> to vector<3x512xf32>
    %38 = vector.extract_strided_slice %0 {offsets = [4, 0], sizes = [1, 512], strides = [1, 1]} : vector<10x512xf32> to vector<1x512xf32>
    %39 = vector.broadcast %38 : vector<1x512xf32> to vector<3x512xf32>
    %40 = arith.mulf %37, %39 : vector<3x512xf32>
    %41 = vector.extract_strided_slice %1 {offsets = [0, 12], sizes = [6, 3], strides = [1, 1]} : vector<6x27xf32> to vector<6x3xf32>
    %cst_17 = arith.constant dense<0.000000e+00> : vector<6x512xf32>
    %42 = tpu.matmul %41, %40, %cst_17 {dimension_numbers = #tpu.dot_dimension_numbers<[1], [0], [0], [1], [0, 0, 1, 1], [], []>} : vector<6x3xf32>, vector<3x512xf32>, vector<6x512xf32> -> vector<6x512xf32>
    %43 = arith.addf %36, %42 : vector<6x512xf32>
    %44 = vector.extract_strided_slice %7 {offsets = [0, 129], sizes = [3, 512], strides = [1, 1]} : vector<3x768xf32> to vector<3x512xf32>
    %45 = vector.extract_strided_slice %0 {offsets = [5, 0], sizes = [1, 512], strides = [1, 1]} : vector<10x512xf32> to vector<1x512xf32>
    %46 = vector.broadcast %45 : vector<1x512xf32> to vector<3x512xf32>
    %47 = arith.mulf %44, %46 : vector<3x512xf32>
    %48 = vector.extract_strided_slice %1 {offsets = [0, 15], sizes = [6, 3], strides = [1, 1]} : vector<6x27xf32> to vector<6x3xf32>
    %cst_18 = arith.constant dense<0.000000e+00> : vector<6x512xf32>
    %49 = tpu.matmul %48, %47, %cst_18 {dimension_numbers = #tpu.dot_dimension_numbers<[1], [0], [0], [1], [0, 0, 1, 1], [], []>} : vector<6x3xf32>, vector<3x512xf32>, vector<6x512xf32> -> vector<6x512xf32>
    %50 = arith.addf %43, %49 : vector<6x512xf32>
    %51 = vector.extract_strided_slice %7 {offsets = [0, 143], sizes = [3, 512], strides = [1, 1]} : vector<3x768xf32> to vector<3x512xf32>
    %52 = vector.extract_strided_slice %0 {offsets = [6, 0], sizes = [1, 512], strides = [1, 1]} : vector<10x512xf32> to vector<1x512xf32>
    %53 = vector.broadcast %52 : vector<1x512xf32> to vector<3x512xf32>
    %54 = arith.mulf %51, %53 : vector<3x512xf32>
    %55 = vector.extract_strided_slice %1 {offsets = [0, 18], sizes = [6, 3], strides = [1, 1]} : vector<6x27xf32> to vector<6x3xf32>
    %cst_19 = arith.constant dense<0.000000e+00> : vector<6x512xf32>
    %56 = tpu.matmul %55, %54, %cst_19 {dimension_numbers = #tpu.dot_dimension_numbers<[1], [0], [0], [1], [0, 0, 1, 1], [], []>} : vector<6x3xf32>, vector<3x512xf32>, vector<6x512xf32> -> vector<6x512xf32>
    %57 = arith.addf %50, %56 : vector<6x512xf32>
    %58 = vector.extract_strided_slice %7 {offsets = [0, 144], sizes = [3, 512], strides = [1, 1]} : vector<3x768xf32> to vector<3x512xf32>
    %59 = vector.extract_strided_slice %0 {offsets = [7, 0], sizes = [1, 512], strides = [1, 1]} : vector<10x512xf32> to vector<1x512xf32>
    %60 = vector.broadcast %59 : vector<1x512xf32> to vector<3x512xf32>
    %61 = arith.mulf %58, %60 : vector<3x512xf32>
    %62 = vector.extract_strided_slice %1 {offsets = [0, 21], sizes = [6, 3], strides = [1, 1]} : vector<6x27xf32> to vector<6x3xf32>
    %cst_20 = arith.constant dense<0.000000e+00> : vector<6x512xf32>
    %63 = tpu.matmul %62, %61, %cst_20 {dimension_numbers = #tpu.dot_dimension_numbers<[1], [0], [0], [1], [0, 0, 1, 1], [], []>} : vector<6x3xf32>, vector<3x512xf32>, vector<6x512xf32> -> vector<6x512xf32>
    %64 = arith.addf %57, %63 : vector<6x512xf32>
    %65 = vector.extract_strided_slice %7 {offsets = [0, 145], sizes = [3, 512], strides = [1, 1]} : vector<3x768xf32> to vector<3x512xf32>
    %66 = vector.extract_strided_slice %0 {offsets = [8, 0], sizes = [1, 512], strides = [1, 1]} : vector<10x512xf32> to vector<1x512xf32>
    %67 = vector.broadcast %66 : vector<1x512xf32> to vector<3x512xf32>
    %68 = arith.mulf %65, %67 : vector<3x512xf32>
    %69 = vector.extract_strided_slice %1 {offsets = [0, 24], sizes = [6, 3], strides = [1, 1]} : vector<6x27xf32> to vector<6x3xf32>
    %cst_21 = arith.constant dense<0.000000e+00> : vector<6x512xf32>
    %70 = tpu.matmul %69, %68, %cst_21 {dimension_numbers = #tpu.dot_dimension_numbers<[1], [0], [0], [1], [0, 0, 1, 1], [], []>} : vector<6x3xf32>, vector<3x512xf32>, vector<6x512xf32> -> vector<6x512xf32>
    %71 = arith.addf %64, %70 : vector<6x512xf32>
    %cst_22 = arith.constant dense<0.000000e+00> : vector<6xf32>
    %72 = vector.multi_reduction <add>, %71, %cst_22 [1] : vector<6x512xf32> to vector<6xf32>
    %73 = vector.shape_cast %72 : vector<6xf32> to vector<6x1xf32>
    %cst_23 = arith.constant 0.001953125 : f32
    %74 = vector.broadcast %cst_23 : f32 to vector<6x1xf32>
    %75 = arith.mulf %73, %74 : vector<6x1xf32>
    %76 = arith.mulf %71, %71 : vector<6x512xf32>
    %cst_24 = arith.constant dense<0.000000e+00> : vector<6xf32>
    %77 = vector.multi_reduction <add>, %76, %cst_24 [1] : vector<6x512xf32> to vector<6xf32>
    %78 = vector.shape_cast %77 : vector<6xf32> to vector<6x1xf32>
    %cst_25 = arith.constant 0.001953125 : f32
    %79 = vector.broadcast %cst_25 : f32 to vector<6x1xf32>
    %80 = arith.mulf %78, %79 : vector<6x1xf32>
    %81 = arith.mulf %75, %75 : vector<6x1xf32>
    %82 = arith.subf %80, %81 : vector<6x1xf32>
    %83 = vector.broadcast %75 : vector<6x1xf32> to vector<6x512xf32>
    %84 = arith.subf %71, %83 : vector<6x512xf32>
    %cst_26 = arith.constant 9.99999974E-6 : f32
    %85 = vector.broadcast %cst_26 : f32 to vector<6x1xf32>
    %86 = arith.addf %82, %85 : vector<6x1xf32>
    %87 = math.rsqrt %86 : vector<6x1xf32>
    %c0_27 = arith.constant 0 : index
    %c0_28 = arith.constant 0 : index
    %88 = vector.load %arg3[%c0_27, %c0_28] : memref<6x1xf32, #tpu.memory_space<vmem>>, vector<6x1xf32>
    %89 = arith.mulf %87, %88 : vector<6x1xf32>
    %90 = vector.broadcast %89 : vector<6x1xf32> to vector<6x512xf32>
    %91 = arith.mulf %84, %90 : vector<6x512xf32>
    %c0_29 = arith.constant 0 : index
    %c0_30 = arith.constant 0 : index
    %92 = vector.load %arg4[%c0_29, %c0_30] : memref<6x1xf32, #tpu.memory_space<vmem>>, vector<6x1xf32>
    %93 = vector.broadcast %92 : vector<6x1xf32> to vector<6x512xf32>
    %94 = arith.addf %91, %93 : vector<6x512xf32>
    %cst_31 = arith.constant 0.000000e+00 : f32
    %95 = vector.broadcast %cst_31 : f32 to vector<6x768xf32>
    %c0_32 = arith.constant 0 : index
    %c0_33 = arith.constant 0 : index
    %96 = vector.load %arg10[%c0_32, %c0_33] : memref<6x768xf32, #tpu.memory_space<vmem>>, vector<6x768xf32>
    tpu.vector_store %arg10[%c0_32, %c0_33], %95 {strides = array<i32>} : memref<6x768xf32, #tpu.memory_space<vmem>>, vector<6x768xf32>,
    %c0_34 = arith.constant 0 : index
    %c128_35 = arith.constant 128 : index
    %97 = vector.load %arg10[%c0_34, %c128_35] : memref<6x768xf32, #tpu.memory_space<vmem>>, vector<6x512xf32>
    tpu.vector_store %arg10[%c0_34, %c128_35], %94 {strides = array<i32>} : memref<6x768xf32, #tpu.memory_space<vmem>>, vector<6x512xf32>,
    %c0_36 = arith.constant 0 : index
    %c0_37 = arith.constant 0 : index
    %98 = vector.load %arg10[%c0_36, %c0_37] : memref<6x768xf32, #tpu.memory_space<vmem>>, vector<6x768xf32>
    %cst_38 = arith.constant 0.000000e+00 : f32
    %99 = vector.broadcast %cst_38 : f32 to vector<6x512xf32>
    %100 = vector.extract_strided_slice %98 {offsets = [0, 111], sizes = [6, 512], strides = [1, 1]} : vector<6x768xf32> to vector<6x512xf32>
    %101 = vector.extract_strided_slice %0 {offsets = [0, 0], sizes = [1, 512], strides = [1, 1]} : vector<10x512xf32> to vector<1x512xf32>
    %102 = vector.broadcast %101 : vector<1x512xf32> to vector<6x512xf32>
    %103 = arith.mulf %100, %102 : vector<6x512xf32>
    %104 = vector.extract_strided_slice %2 {offsets = [0, 0], sizes = [6, 6], strides = [1, 1]} : vector<6x54xf32> to vector<6x6xf32>
    %cst_39 = arith.constant dense<0.000000e+00> : vector<6x512xf32>
    %105 = tpu.matmul %104, %103, %cst_39 {dimension_numbers = #tpu.dot_dimension_numbers<[1], [0], [0], [1], [0, 0, 1, 1], [], []>} : vector<6x6xf32>, vector<6x512xf32>, vector<6x512xf32> -> vector<6x512xf32>
    %106 = arith.addf %99, %105 : vector<6x512xf32>
    %107 = vector.extract_strided_slice %98 {offsets = [0, 112], sizes = [6, 512], strides = [1, 1]} : vector<6x768xf32> to vector<6x512xf32>
    %108 = vector.extract_strided_slice %0 {offsets = [1, 0], sizes = [1, 512], strides = [1, 1]} : vector<10x512xf32> to vector<1x512xf32>
    %109 = vector.broadcast %108 : vector<1x512xf32> to vector<6x512xf32>
    %110 = arith.mulf %107, %109 : vector<6x512xf32>
    %111 = vector.extract_strided_slice %2 {offsets = [0, 6], sizes = [6, 6], strides = [1, 1]} : vector<6x54xf32> to vector<6x6xf32>
    %cst_40 = arith.constant dense<0.000000e+00> : vector<6x512xf32>
    %112 = tpu.matmul %111, %110, %cst_40 {dimension_numbers = #tpu.dot_dimension_numbers<[1], [0], [0], [1], [0, 0, 1, 1], [], []>} : vector<6x6xf32>, vector<6x512xf32>, vector<6x512xf32> -> vector<6x512xf32>
    %113 = arith.addf %106, %112 : vector<6x512xf32>
    %114 = vector.extract_strided_slice %98 {offsets = [0, 113], sizes = [6, 512], strides = [1, 1]} : vector<6x768xf32> to vector<6x512xf32>
    %115 = vector.extract_strided_slice %0 {offsets = [2, 0], sizes = [1, 512], strides = [1, 1]} : vector<10x512xf32> to vector<1x512xf32>
    %116 = vector.broadcast %115 : vector<1x512xf32> to vector<6x512xf32>
    %117 = arith.mulf %114, %116 : vector<6x512xf32>
    %118 = vector.extract_strided_slice %2 {offsets = [0, 12], sizes = [6, 6], strides = [1, 1]} : vector<6x54xf32> to vector<6x6xf32>
    %cst_41 = arith.constant dense<0.000000e+00> : vector<6x512xf32>
    %119 = tpu.matmul %118, %117, %cst_41 {dimension_numbers = #tpu.dot_dimension_numbers<[1], [0], [0], [1], [0, 0, 1, 1], [], []>} : vector<6x6xf32>, vector<6x512xf32>, vector<6x512xf32> -> vector<6x512xf32>
    %120 = arith.addf %113, %119 : vector<6x512xf32>
    %121 = vector.extract_strided_slice %98 {offsets = [0, 127], sizes = [6, 512], strides = [1, 1]} : vector<6x768xf32> to vector<6x512xf32>
    %122 = vector.extract_strided_slice %0 {offsets = [3, 0], sizes = [1, 512], strides = [1, 1]} : vector<10x512xf32> to vector<1x512xf32>
    %123 = vector.broadcast %122 : vector<1x512xf32> to vector<6x512xf32>
    %124 = arith.mulf %121, %123 : vector<6x512xf32>
    %125 = vector.extract_strided_slice %2 {offsets = [0, 18], sizes = [6, 6], strides = [1, 1]} : vector<6x54xf32> to vector<6x6xf32>
    %cst_42 = arith.constant dense<0.000000e+00> : vector<6x512xf32>
    %126 = tpu.matmul %125, %124, %cst_42 {dimension_numbers = #tpu.dot_dimension_numbers<[1], [0], [0], [1], [0, 0, 1, 1], [], []>} : vector<6x6xf32>, vector<6x512xf32>, vector<6x512xf32> -> vector<6x512xf32>
    %127 = arith.addf %120, %126 : vector<6x512xf32>
    %128 = vector.extract_strided_slice %98 {offsets = [0, 128], sizes = [6, 512], strides = [1, 1]} : vector<6x768xf32> to vector<6x512xf32>
    %129 = vector.extract_strided_slice %0 {offsets = [4, 0], sizes = [1, 512], strides = [1, 1]} : vector<10x512xf32> to vector<1x512xf32>
    %130 = vector.broadcast %129 : vector<1x512xf32> to vector<6x512xf32>
    %131 = arith.mulf %128, %130 : vector<6x512xf32>
    %132 = vector.extract_strided_slice %2 {offsets = [0, 24], sizes = [6, 6], strides = [1, 1]} : vector<6x54xf32> to vector<6x6xf32>
    %cst_43 = arith.constant dense<0.000000e+00> : vector<6x512xf32>
    %133 = tpu.matmul %132, %131, %cst_43 {dimension_numbers = #tpu.dot_dimension_numbers<[1], [0], [0], [1], [0, 0, 1, 1], [], []>} : vector<6x6xf32>, vector<6x512xf32>, vector<6x512xf32> -> vector<6x512xf32>
    %134 = arith.addf %127, %133 : vector<6x512xf32>
    %135 = vector.extract_strided_slice %98 {offsets = [0, 129], sizes = [6, 512], strides = [1, 1]} : vector<6x768xf32> to vector<6x512xf32>
    %136 = vector.extract_strided_slice %0 {offsets = [5, 0], sizes = [1, 512], strides = [1, 1]} : vector<10x512xf32> to vector<1x512xf32>
    %137 = vector.broadcast %136 : vector<1x512xf32> to vector<6x512xf32>
    %138 = arith.mulf %135, %137 : vector<6x512xf32>
    %139 = vector.extract_strided_slice %2 {offsets = [0, 30], sizes = [6, 6], strides = [1, 1]} : vector<6x54xf32> to vector<6x6xf32>
    %cst_44 = arith.constant dense<0.000000e+00> : vector<6x512xf32>
    %140 = tpu.matmul %139, %138, %cst_44 {dimension_numbers = #tpu.dot_dimension_numbers<[1], [0], [0], [1], [0, 0, 1, 1], [], []>} : vector<6x6xf32>, vector<6x512xf32>, vector<6x512xf32> -> vector<6x512xf32>
    %141 = arith.addf %134, %140 : vector<6x512xf32>
    %142 = vector.extract_strided_slice %98 {offsets = [0, 143], sizes = [6, 512], strides = [1, 1]} : vector<6x768xf32> to vector<6x512xf32>
    %143 = vector.extract_strided_slice %0 {offsets = [6, 0], sizes = [1, 512], strides = [1, 1]} : vector<10x512xf32> to vector<1x512xf32>
    %144 = vector.broadcast %143 : vector<1x512xf32> to vector<6x512xf32>
    %145 = arith.mulf %142, %144 : vector<6x512xf32>
    %146 = vector.extract_strided_slice %2 {offsets = [0, 36], sizes = [6, 6], strides = [1, 1]} : vector<6x54xf32> to vector<6x6xf32>
    %cst_45 = arith.constant dense<0.000000e+00> : vector<6x512xf32>
    %147 = tpu.matmul %146, %145, %cst_45 {dimension_numbers = #tpu.dot_dimension_numbers<[1], [0], [0], [1], [0, 0, 1, 1], [], []>} : vector<6x6xf32>, vector<6x512xf32>, vector<6x512xf32> -> vector<6x512xf32>
    %148 = arith.addf %141, %147 : vector<6x512xf32>
    %149 = vector.extract_strided_slice %98 {offsets = [0, 144], sizes = [6, 512], strides = [1, 1]} : vector<6x768xf32> to vector<6x512xf32>
    %150 = vector.extract_strided_slice %0 {offsets = [7, 0], sizes = [1, 512], strides = [1, 1]} : vector<10x512xf32> to vector<1x512xf32>
    %151 = vector.broadcast %150 : vector<1x512xf32> to vector<6x512xf32>
    %152 = arith.mulf %149, %151 : vector<6x512xf32>
    %153 = vector.extract_strided_slice %2 {offsets = [0, 42], sizes = [6, 6], strides = [1, 1]} : vector<6x54xf32> to vector<6x6xf32>
    %cst_46 = arith.constant dense<0.000000e+00> : vector<6x512xf32>
    %154 = tpu.matmul %153, %152, %cst_46 {dimension_numbers = #tpu.dot_dimension_numbers<[1], [0], [0], [1], [0, 0, 1, 1], [], []>} : vector<6x6xf32>, vector<6x512xf32>, vector<6x512xf32> -> vector<6x512xf32>
    %155 = arith.addf %148, %154 : vector<6x512xf32>
    %156 = vector.extract_strided_slice %98 {offsets = [0, 145], sizes = [6, 512], strides = [1, 1]} : vector<6x768xf32> to vector<6x512xf32>
    %157 = vector.extract_strided_slice %0 {offsets = [8, 0], sizes = [1, 512], strides = [1, 1]} : vector<10x512xf32> to vector<1x512xf32>
    %158 = vector.broadcast %157 : vector<1x512xf32> to vector<6x512xf32>
    %159 = arith.mulf %156, %158 : vector<6x512xf32>
    %160 = vector.extract_strided_slice %2 {offsets = [0, 48], sizes = [6, 6], strides = [1, 1]} : vector<6x54xf32> to vector<6x6xf32>
    %cst_47 = arith.constant dense<0.000000e+00> : vector<6x512xf32>
    %161 = tpu.matmul %160, %159, %cst_47 {dimension_numbers = #tpu.dot_dimension_numbers<[1], [0], [0], [1], [0, 0, 1, 1], [], []>} : vector<6x6xf32>, vector<6x512xf32>, vector<6x512xf32> -> vector<6x512xf32>
    %162 = arith.addf %155, %161 : vector<6x512xf32>
    %163 = vector.extract_strided_slice %0 {offsets = [9, 0], sizes = [1, 512], strides = [1, 1]} : vector<10x512xf32> to vector<1x512xf32>
    %cst_48 = arith.constant dense<0.000000e+00> : vector<1xf32>
    %164 = vector.multi_reduction <add>, %163, %cst_48 [1] : vector<1x512xf32> to vector<1xf32>
    %165 = vector.shape_cast %164 : vector<1xf32> to vector<1x1xf32>
    %166 = vector.broadcast %163 : vector<1x512xf32> to vector<6x512xf32>
    %167 = arith.mulf %162, %166 : vector<6x512xf32>
    %cst_49 = arith.constant dense<0.000000e+00> : vector<6xf32>
    %168 = vector.multi_reduction <add>, %167, %cst_49 [1] : vector<6x512xf32> to vector<6xf32>
    %169 = vector.shape_cast %168 : vector<6xf32> to vector<6x1xf32>
    %170 = vector.broadcast %165 : vector<1x1xf32> to vector<6x1xf32>
    %171 = arith.divf %169, %170 : vector<6x1xf32>
    %172 = arith.mulf %162, %162 : vector<6x512xf32>
    %173 = vector.broadcast %163 : vector<1x512xf32> to vector<6x512xf32>
    %174 = arith.mulf %172, %173 : vector<6x512xf32>
    %cst_50 = arith.constant dense<0.000000e+00> : vector<6xf32>
    %175 = vector.multi_reduction <add>, %174, %cst_50 [1] : vector<6x512xf32> to vector<6xf32>
    %176 = vector.shape_cast %175 : vector<6xf32> to vector<6x1xf32>
    %177 = vector.broadcast %165 : vector<1x1xf32> to vector<6x1xf32>
    %178 = arith.divf %176, %177 : vector<6x1xf32>
    %179 = arith.mulf %171, %171 : vector<6x1xf32>
    %180 = arith.subf %178, %179 : vector<6x1xf32>
    %181 = vector.broadcast %171 : vector<6x1xf32> to vector<6x512xf32>
    %182 = arith.subf %162, %181 : vector<6x512xf32>
    %cst_51 = arith.constant 9.99999974E-6 : f32
    %183 = vector.broadcast %cst_51 : f32 to vector<6x1xf32>
    %184 = arith.addf %180, %183 : vector<6x1xf32>
    %185 = math.rsqrt %184 : vector<6x1xf32>
    %c0_52 = arith.constant 0 : index
    %c0_53 = arith.constant 0 : index
    %186 = vector.load %arg6[%c0_52, %c0_53] : memref<6x1xf32, #tpu.memory_space<vmem>>, vector<6x1xf32>
    %187 = arith.mulf %185, %186 : vector<6x1xf32>
    %188 = vector.broadcast %187 : vector<6x1xf32> to vector<6x512xf32>
    %189 = arith.mulf %182, %188 : vector<6x512xf32>
    %c0_54 = arith.constant 0 : index
    %c0_55 = arith.constant 0 : index
    %190 = vector.load %arg7[%c0_54, %c0_55] : memref<6x1xf32, #tpu.memory_space<vmem>>, vector<6x1xf32>
    %191 = vector.broadcast %190 : vector<6x1xf32> to vector<6x512xf32>
    %192 = arith.addf %189, %191 : vector<6x512xf32>
    %c0_56 = arith.constant 0 : index
    %c0_57 = arith.constant 0 : index
    %193 = vector.load %arg8[%c0_56, %c0_57] : memref<6x512xf32, #tpu.memory_space<vmem>>, vector<6x512xf32>
    tpu.vector_store %arg8[%c0_56, %c0_57], %192 {strides = array<i32>} : memref<6x512xf32, #tpu.memory_space<vmem>>, vector<6x512xf32>,
    return
  }
}

</mosaic_0001>

<bundles_post_ra>
// kernel: _net_forward_impl.1
= control target key start
LH: loop header
LB: loop body
LE: loop exit
PB: predicated region body
PF: predicated region fallthrough
CT: control target
= control target key end

     0   :  { %vm59_vm0 = vcmask 1043456   ;;  %s2873_s13 = smov 112   ;;  %s2874_s14 = smov 111   ;;  %v2875_v23 = vmov 0.0   ;;  %vm96_vm1 = vcmask 916480   ;;  %vm68_vm2 = vcmask 908288   ;;  %s3939_s1 = inlined_call_operand.vmem [shape: f32[10,512], index: 1, kind: input, shape index: {}]   ;;  %s3940_s2 = inlined_call_operand.vmem [shape: f32[6,27], index: 2, kind: input, shape index: {}]   ;;  %s3941_s0 = inlined_call_operand.vmem [shape: f32[3,512], index: 0, kind: input, shape index: {}]   ;;  %s3942_s4 = inlined_call_operand.vmem [shape: f32[6,1], index: 4, kind: input, shape index: {}]   ;;  %s3943_s5 = inlined_call_operand.vmem [shape: f32[6,54], index: 5, kind: input, shape index: {}]   ;;  %s3944_s3 = inlined_call_operand.vmem [shape: f32[6,1], index: 3, kind: input, shape index: {}]   ;;  %s3945_s7 = inlined_call_operand.vmem [shape: f32[6,1], index: 7, kind: input, shape index: {}]   ;;  %s3946_s6 = inlined_call_operand.vmem [shape: f32[6,1], index: 6, kind: input, shape index: {}]   ;;  %s3947_s8 = inlined_call_operand.vmem [shape: f32[6,512], index: 8, kind: output, shape index: {}]  }
   0x1   :  { %v2942_v0 = vld [vmem:[%s3939_s1] sm:$0xff]  ;;  %v2947_v1 = vld [vmem:[%s3939_s1 + $0x8] sm:$0xff]  ;;  %v2954_v4 = vld [vmem:[%s3939_s1 + $0x18] sm:$0xff]  ;;  %39 = vst [vmem:[#allocation2] sm:$0x77] %v2875_v23  ;;  %s2876_s15 = smov 113  }
   0x2   :  { %v78_v2 = vperm.slane %v2942_v0, 1  ;;  %v79_v3 = vperm.slane %v2947_v1, 1  ;;  %v49_v5 = vperm.slane %v2942_v0, 0  ;;  %v50_v6 = vperm.slane %v2947_v1, 0  ;;  %v2966_v10 = vld [vmem:[%s3939_s1 + $0x10] sm:$0xff]  ;;  %s2877_s16 = smov 127  }
   0x3   :  { %v81_v8 = vperm.slane %v2954_v4, 1  ;;  %v52_v11 = vperm.slane %v2954_v4, 0  ;;  %v347_v14 = vperm.slane %v2942_v0, 2  ;;  %v348_v15 = vperm.slane %v2947_v1, 2  ;;  %40 = vst [vmem:[#allocation2 + $0x8] sm:$0x77] %v2875_v23 }
   0x4   :  { %v86_v7 = vrot.slane %v79_v3, 4  ;;  %v57_v9 = vrot.slane %v50_v6, 4  ;;  %v80_v16 = vperm.slane %v2966_v10, 1  ;;  %v51_v18 = vperm.slane %v2966_v10, 0  ;;  %41 = vst [vmem:[#allocation2 + $0x10] sm:$0x77] %v2875_v23 }
   0x5   :  { %v87_v17 = vrot.slane %v81_v8, 4  ;;  %v58_v19 = vrot.slane %v52_v11, 4  ;;  %v355_v20 = vrot.slane %v348_v15, 4  ;;  %v350_v21 = vperm.slane %v2954_v4, 2  ;;  %1389 = vst [vmem:[#allocation3 + $0x28] sm:$0x3f] %v2875_v23 }
   0x6   :  { %v88_v12 = vsel %vm59_vm0, %v78_v2, %v86_v7  ;;  %v60_v13 = vsel %vm59_vm0, %v49_v5, %v57_v9  ;;  %v500_v25 = vperm.slane %v2947_v1, 3  ;;  %v502_v27 = vperm.slane %v2954_v4, 3  ;;  %1390 = vst [vmem:[#allocation3 + $0x10] sm:$0x3f] %v2875_v23  ;;  %v3026_v37 = vld [vmem:[%s3940_s2] sm:$0x3f] }
   0x7   :  { %90 = vrot.lane.b32.xlu0 %v88_v12, %s2873_s13  ;;  %62 = vrot.lane.b32.xlu1 %v60_v13, %s2874_s14  ;;  %v357_v22 = vsel %vm59_vm0, %v347_v14, %v355_v20  ;;  %v89_v24 = vsel %vm59_vm0, %v80_v16, %v87_v17  ;;  %v61_v26 = vsel %vm59_vm0, %v51_v18, %v58_v19  ;;  %v349_v28 = vperm.slane %v2966_v10, 2  ;;  %s2878_s19 = smov 122   ;;  %s2879_s20 = smov 125   ;;  %v42_v38 = vld [vmem:[%s3941_s0] sm:$0x77] }
   0x8   :  { %359 = vrot.lane.b32.xlu2 %v357_v22, %s2876_s15  ;;  %v356_v29 = vrot.slane %v350_v21, 4  ;;  %v499_v30 = vperm.slane %v2942_v0, 3  ;;  %v507_v31 = vrot.slane %v500_v25, 4  ;;  %1391 = vst [vmem:[#allocation3 + $0x8] sm:$0x3f] %v2875_v23  ;;  %v501_v32 = vperm.slane %v2966_v10, 3 }
   0x9   :  { %v508_v33 = vrot.slane %v502_v27, 4  ;;  %1392 = vst [vmem:[#allocation3] sm:$0x3f] %v2875_v23  ;;  %s2880_s21 = smov 119   ;;  %v43_v39 = vld [vmem:[%s3941_s0 + $0x8] sm:$0x77] }
   0xa   :  { %v358_v34 = vsel %vm59_vm0, %v349_v28, %v356_v29  ;;  %1393 = vst [vmem:[#allocation3 + $0x18] sm:$0x3f] %v2875_v23  ;;  %v509_v35 = vsel %vm59_vm0, %v499_v30, %v507_v31  ;;  %s2881_s0 = smov 16   ;;  %vm365_vm3 = vcmask 924672   ;;  %vm517_vm4 = vcmask 1039360   ;;  %s2882_s2 = smov 17  }
   0xb   :  { %1394 = vst [vmem:[#allocation3 + $0x20] sm:$0x3f] %v2875_v23  ;;  %v510_v36 = vsel %vm59_vm0, %v501_v32, %v508_v33  ;;  %s2883_s26 = smov 15   ;;  %s2884_s27 = smov 1   ;;  %vm132_vm5 = vcmask 130048   ;;  %vm140_vm6 = vcmask 1042432  }
   0xc   :  { %44 = vst [vmem:[#allocation2 + $0x4] sm:$0x77] %v42_v38  ;;  %s2885_s28 = smov 110   ;;  %s2886_s29 = smov 116   ;;  %vm137_vm7 = vcmask 23552   ;;  %vm252_vm8 = vcmask 138240  }
   0xd   :  { %45 = vst [vmem:[#allocation2 + $0xc] sm:$0x77] %v43_v39  ;;  %s2887_s30 = smov 107   ;;  %s2888_s9 = smov 104   ;;  %vm400_vm9 = vcmask 121856   ;;  %vm552_vm10 = vcmask 7168  }
   0xe   :  { %vm1326_vm11 = vcmask 1045504   ;;  %vm1469_vm15 = vcmask 48128  }
   0xf   :  { %92 = vrot.lane.b32.xlu0 %v89_v24, %s2873_s13  ;;  %64 = vrot.lane.b32.xlu1 %v61_v26, %s2874_s14 }
  0x10   :  { %361 = vrot.lane.b32.xlu2 %v358_v34, %s2876_s15 }
  0x13   :  { %v3046_v43 = vld [vmem:[#allocation2] sm:$0x77] }
  0x14   :  { %v3038_v40 = vld [vmem:[#allocation2 + $0x10] sm:$0x77]  ;;  %v3042_v41 = vld [vmem:[#allocation2 + $0x8] sm:$0x77] }
  0x17   :  { %511 = vrot.lane.b32.xlu0 %v509_v35, %s2877_s16  ;;  %513 = vrot.lane.b32.xlu1 %v510_v36, %s2877_s16  ;;  %v3950_v35 = vperm.slane %v2947_v1, 4 }
  0x18   :  { %788 = vrot.lane.b32.xlu2 %v3042_v41, %s2877_s16 }
  0x1f   :  { %375 = vrot.lane.b32.xlu0 %v3026_v37, %s2878_s19  ;;  %107 = vrot.lane.b32.xlu1 %v3026_v37, %s2879_s20 }
  0x27   :  { %527 = vrot.lane.b32.xlu0 %v3026_v37, %s2880_s21 }
  0x2f   :  { %790 = vrot.lane.b32.xlu0 %v3038_v40, %s2877_s16 }
  0x62   :  { %v360_v49 = vpop.permute.xlu2 %359 }
  0x63   :  { %v363_v63 = vrot.slane %v360_v49, 4 }
  0x65   :  { %v366_v13 = vsel %vm365_vm3, %v363_v63, %v360_v49 }
  0x66   :  { %v372_v31 = vmul.f32 %v366_v13, %v3046_v43 }
  0x6a   :  { %v362_v7 = vpop.permute.xlu2 %361 }
  0x6b   :  { %v364_v12 = vrot.slane %v362_v7, 4 }
  0x6d   :  { %v367_v33 = vsel %vm59_vm0, %v363_v63, %v364_v12 }
  0x6e   :  { %v368_v39 = vsel %vm365_vm3, %v367_v33, %v362_v7  ;;  %v660_v7 = vrot.slane %v3038_v40, 4 }
  0x79   :  { %v91_v42 = vpop.permute.xlu0 %90  ;;  %v63_v45 = vpop.permute.xlu1 %62 }
  0x7a   :  { %v94_v44 = vrot.slane %v91_v42, 4  ;;  %v66_v48 = vrot.slane %v63_v45, 4 }
  0x7c   :  { %v97_v46 = vsel %vm96_vm1, %v94_v44, %v91_v42  ;;  %v69_v51 = vsel %vm68_vm2, %v66_v48, %v63_v45  ;;  %v3951_v45 = vperm.slane %v2942_v0, 4 }
  0x7d   :  { %v103_v47 = vmul.f32 %v97_v46, %v3046_v43  ;;  %v75_v56 = vmul.f32 %v69_v51, %v3046_v43  ;;  %v669_v46 = vrot.slane %v3950_v35, 4 }
  0x7f   :  { %112 = vst [vmem:[#allocation1] ss:$2 sm:$0xff] %v103_v47  ;;  %v373_v47 = vmul.f32 %v368_v39, %v3042_v41 }
  0x81   :  { %v93_v50 = vpop.permute.xlu0 %92  ;;  %v65_v53 = vpop.permute.xlu1 %64 }
  0x82   :  { %v95_v52 = vrot.slane %v93_v50, 4  ;;  %v67_v55 = vrot.slane %v65_v53, 4 }
  0x84   :  { %v98_v54 = vsel %vm59_vm0, %v94_v44, %v95_v52  ;;  %v105_v58 = vmul.f32 %v95_v52, %v3038_v40  ;;  %v70_v62 = vsel %vm59_vm0, %v66_v48, %v67_v55  ;;  %v77_v17 = vmul.f32 %v67_v55, %v3038_v40 }
  0x85   :  { %v99_v57 = vsel %vm96_vm1, %v98_v54, %v93_v50  ;;  %v71_v9 = vsel %vm68_vm2, %v70_v62, %v65_v53  ;;  %v374_v44 = vmul.f32 %v364_v12, %v3038_v40  ;;  %v658_v52 = vrot.slane %v3046_v43, 4 }
  0x86   :  { %v117_v59 = vld.sshfl [vmem:[#allocation1] sm:$0xff pattern:$0x75316420]  ;;  %v118_v60 = vld.sshfl [vmem:[#allocation1 + $0x8] sm:$0xff pattern:$0x75316420]  ;;  %v104_v61 = vmul.f32 %v99_v57, %v3042_v41  ;;  %v76_v19 = vmul.f32 %v71_v9, %v3042_v41 }
  0x87   :  { %232 = vst [vmem:[#allocation1] ss:$2 sm:$0xff] %v75_v56  ;;  %124 = vrot.lane.b32.xlu1 %v118_v60, %s2881_s0  ;;  %122 = vrot.lane.b32.xlu0 %v117_v59, %s2881_s0  ;;  %v3948_v54 = vperm.slane %v2954_v4, 4  ;;  %v659_v55 = vrot.slane %v3042_v41, 4  ;;  %v671_v59 = vsel %vm59_vm0, %v3951_v45, %v669_v46  ;;  %v3949_v62 = vperm.slane %v2966_v10, 4 }
  0x88   :  { %114 = vst [vmem:[#allocation1 + $0x10] ss:$2 sm:$0xff] %v104_v61 }
  0x89   :  { %116 = vst [vmem:[#allocation1 + $0x20] ss:$2 sm:$0xff] %v105_v58  ;;  %v512_v26 = vpop.permute.xlu0 %511  ;;  %v514_v29 = vpop.permute.xlu1 %513  ;;  %v661_v60 = vsel %vm59_vm0, %v658_v52, %v659_v55  ;;  %v670_v63 = vrot.slane %v3948_v54, 4 }
  0x8a   :  { %v515_v36 = vrot.slane %v512_v26, 4  ;;  %v516_v38 = vrot.slane %v514_v29, 4  ;;  %v675_v12 = vmul.f32 %v671_v59, %v661_v60  ;;  %v783_v59 = vperm.slane %v2947_v1, 5 }
  0x8c   :  { %v518_v42 = vsel %vm517_vm4, %v515_v36, %v512_v26  ;;  %v519_v48 = vsel %vm59_vm0, %v515_v36, %v516_v38  ;;  %v526_v9 = vmul.f32 %v516_v38, %v3038_v40  ;;  %v3131_v38 = vpop.permute.xlu2 %788 }
  0x8d   :  { %v524_v50 = vmul.f32 %v518_v42, %v3046_v43  ;;  %v520_v56 = vsel %vm517_vm4, %v519_v48, %v514_v29  ;;  %v793_v39 = vrot.slane %v3131_v38, 4  ;;  %v784_v42 = vperm.slane %v2966_v10, 5 }
  0x8e   :  { %v238_v20 = vld.sshfl [vmem:[#allocation1 + $0x8] sm:$0xff pattern:$0x75316420]  ;;  %v237_v22 = vld.sshfl [vmem:[#allocation1] sm:$0xff pattern:$0x75316420]  ;;  %v525_v61 = vmul.f32 %v520_v56, %v3042_v41 }
  0x8f   :  { %v119_v23 = vld.sshfl [vmem:[#allocation1 + $0x10] sm:$0xff pattern:$0x75316420]  ;;  %v120_v24 = vld.sshfl [vmem:[#allocation1 + $0x18] sm:$0xff pattern:$0x75316420] }
  0x90   :  { %234 = vst [vmem:[#allocation1 + $0x10] ss:$2 sm:$0xff] %v76_v19  ;;  %v121_v34 = vld.sshfl [vmem:[#allocation1 + $0x20] sm:$0xff pattern:$0x75316420]  ;;  %128 = vrot.lane.b32.xlu0 %v120_v24, %s2881_s0 }
  0x91   :  { %236 = vst [vmem:[#allocation1 + $0x20] ss:$2 sm:$0xff] %v77_v17  ;;  %130 = vrot.lane.b32.xlu2 %v121_v34, %s2881_s0  ;;  %v108_v56 = vpop.permute.xlu1 %107 }
  0x92   :  { %380 = vst [vmem:[#allocation1] ss:$2 sm:$0xff] %v372_v31 }
  0x97   :  { %v239_v49 = vld.sshfl [vmem:[#allocation1 + $0x10] sm:$0xff pattern:$0x75316420]  ;;  %v240_v51 = vld.sshfl [vmem:[#allocation1 + $0x18] sm:$0xff pattern:$0x75316420] }
  0x98   :  { %v241_v53 = vld.sshfl [vmem:[#allocation1 + $0x20] sm:$0xff pattern:$0x75316420]  ;;  %244 = vrot.lane.b32.xlu0 %v238_v20, %s2882_s2  ;;  %382 = vst [vmem:[#allocation1 + $0x10] ss:$2 sm:$0xff] %v373_v47  ;;  %v672_v20 = vsel %vm59_vm0, %v3949_v62, %v670_v63 }
  0x99   :  { %126 = vrot.lane.b32.xlu2 %v119_v23, %s2881_s0  ;;  %384 = vst [vmem:[#allocation1 + $0x20] ss:$2 sm:$0xff] %v374_v44  ;;  %250 = vrot.lane.b32.xlu1 %v241_v53, %s2882_s2  ;;  %v386_v57 = vld.sshfl [vmem:[#allocation1 + $0x8] sm:$0xff pattern:$0x75316420]  ;;  %v662_v23 = vsel %vm59_vm0, %v659_v55, %v660_v7  ;;  %v785_v44 = vperm.slane %v2954_v4, 5 }
  0x9a   :  { %v385_v58 = vld.sshfl [vmem:[#allocation1] sm:$0xff pattern:$0x75316420]  ;;  %v676_v29 = vmul.f32 %v672_v20, %v662_v23  ;;  %v921_v23 = vperm.slane %v2954_v4, 6 }
  0x9b   :  { %532 = vst [vmem:[#allocation1] ss:$2 sm:$0xff] %v524_v50  ;;  %v806_v48 = vrot.slane %v785_v44, 4 }
  0x9d   :  { %v808_v50 = vsel %vm59_vm0, %v784_v42, %v806_v48 }
  0x9f   :  { %v387_v13 = vld.sshfl [vmem:[#allocation1 + $0x10] sm:$0xff pattern:$0x75316420]  ;;  %v388_v17 = vld.sshfl [vmem:[#allocation1 + $0x18] sm:$0xff pattern:$0x75316420] }
  0xa0   :  { %v389_v19 = vld.sshfl [vmem:[#allocation1 + $0x20] sm:$0xff pattern:$0x75316420]  ;;  %248 = vrot.lane.b32.xlu0 %v240_v51, %s2882_s2  ;;  %534 = vst [vmem:[#allocation1 + $0x10] ss:$2 sm:$0xff] %v525_v61 }
  0xa1   :  { %536 = vst [vmem:[#allocation1 + $0x20] ss:$2 sm:$0xff] %v526_v9  ;;  %398 = vrot.lane.b32.xlu1 %v389_v19, %s2883_s26  ;;  %242 = vrot.lane.b32.xlu2 %v237_v22, %s2882_s2  ;;  %v3116_v22 = vpop.permute.xlu0 %375 }
  0xa2   :  { %v537_v24 = vld.sshfl [vmem:[#allocation1] sm:$0xff pattern:$0x75316420]  ;;  %v538_v26 = vld.sshfl [vmem:[#allocation1 + $0x8] sm:$0xff pattern:$0x75316420] }
  0xa3   :  { %681 = vst [vmem:[#allocation1] ss:$2 sm:$0xff] %v675_v12 }
  0xa7   :  { %v539_v31 = vld.sshfl [vmem:[#allocation1 + $0x10] sm:$0xff pattern:$0x75316420]  ;;  %v540_v33 = vld.sshfl [vmem:[#allocation1 + $0x18] sm:$0xff pattern:$0x75316420] }
  0xa8   :  { %392 = vrot.lane.b32.xlu0 %v386_v57, %s2883_s26  ;;  %683 = vst [vmem:[#allocation1 + $0x10] ss:$2 sm:$0xff] %v676_v29  ;;  %v541_v34 = vld.sshfl [vmem:[#allocation1 + $0x20] sm:$0xff pattern:$0x75316420] }
  0xa9   :  { %394 = vrot.lane.b32.xlu1 %v387_v13, %s2883_s26  ;;  %246 = vrot.lane.b32.xlu2 %v239_v49, %s2882_s2  ;;  %v3123_v36 = vpop.permute.xlu0 %527 }
  0xaf   :  { %v3146_v53 = vld.sshfl [vmem:[#allocation1 + $0x10] sm:$0xff pattern:$0x75316420]  ;;  %v3152_v55 = vld.sshfl [vmem:[#allocation1 + $0x18] sm:$0xff pattern:$0x75316420] }
  0xb0   :  { %786 = vrot.lane.b32.xlu0 %v3046_v43, %s2877_s16 }
  0xb1   :  { %550 = vrot.lane.b32.xlu1 %v541_v34, %s2884_s27  ;;  %390 = vrot.lane.b32.xlu2 %v385_v58, %s2883_s26  ;;  %v791_v46 = vpop.permute.xlu0 %790 }
  0xb2   :  { %v794_v47 = vrot.slane %v791_v46, 4 }
  0xb4   :  { %v797_v49 = vsel %vm59_vm0, %v793_v39, %v794_v47 }
  0xb5   :  { %v798_v51 = vsel %vm517_vm4, %v797_v49, %v791_v46 }
  0xb6   :  { %v812_v52 = vmul.f32 %v808_v50, %v798_v51 }
  0xb8   :  { %926 = vrot.lane.b32.xlu0 %v3038_v40, %s2876_s15  ;;  %819 = vst [vmem:[#allocation1 + $0x10] ss:$2 sm:$0xff] %v812_v52 }
  0xb9   :  { %396 = vrot.lane.b32.xlu2 %v388_v17, %s2883_s26  ;;  %542 = vrot.lane.b32.xlu1 %v537_v24, %s2884_s27 }
  0xc0   :  { %1060 = vrot.lane.b32.xlu0 %v3042_v41, %s2873_s13 }
  0xc1   :  { %544 = vrot.lane.b32.xlu2 %v538_v26, %s2884_s27  ;;  %546 = vrot.lane.b32.xlu1 %v539_v31, %s2884_s27 }
  0xc8   :  { %949 = vrot.lane.b32.xlu0 %v3026_v37, %s2885_s28 }
  0xc9   :  { %548 = vrot.lane.b32.xlu2 %v540_v33, %s2884_s27  ;;  %677 = vrot.lane.b32.xlu1 %v3026_v37, %s2886_s29 }
  0xd0   :  { %1194 = vrot.lane.b32.xlu0 %v3046_v43, %s2874_s14 }
  0xd1   :  { %922 = vrot.lane.b32.xlu1 %v3046_v43, %s2876_s15  ;;  %924 = vrot.lane.b32.xlu2 %v3042_v41, %s2876_s15 }
  0xd8   :  { %1407 = vrot.lane.b32.xlu0 %v50_v6, %s2874_s14 }
  0xd9   :  { %1062 = vrot.lane.b32.xlu1 %v3038_v40, %s2873_s13  ;;  %813 = vrot.lane.b32.xlu2 %v3026_v37, %s2876_s15 }
  0xe0   :  { %1671 = vrot.lane.b32.xlu0 %v348_v15, %s2876_s15 }
  0xe1   :  { %1196 = vrot.lane.b32.xlu1 %v3042_v41, %s2874_s14  ;;  %1058 = vrot.lane.b32.xlu2 %v3046_v43, %s2873_s13 }
  0xe8   :  { %1669 = vrot.lane.b32.xlu0 %v347_v14, %s2876_s15 }
  0xe9   :  { %1085 = vrot.lane.b32.xlu1 %v3026_v37, %s2887_s30  ;;  %1198 = vrot.lane.b32.xlu2 %v3038_v40, %s2874_s14 }
  0xeb   :  { %v131_v6 = vpop.permute.xlu2 %130 }
  0xf0   :  { %1811 = vrot.lane.b32.xlu0 %v502_v27, %s2877_s16 }
  0xf1   :  { %1221 = vrot.lane.b32.xlu2 %v3026_v37, %s2888_s9  ;;  %1409 = vrot.lane.b32.xlu1 %v51_v18, %s2874_s14 }
  0xf3   :  { %v127_v14 = vpop.permute.xlu2 %126 }
  0xf8   :  { %2049 = vrot.lane.b32.xlu0 %v784_v42, %s2884_s27  ;;  %v805_v42 = vrot.slane %v783_v59, 4 }
  0xf9   :  { %v125_v15 = vpop.permute.xlu1 %124  ;;  %v123_v40 = vpop.permute.xlu0 %122  ;;  %1675 = vrot.lane.b32.xlu1 %v350_v21, %s2876_s15 }
  0xfa   :  { %v133_v27 = vsel %vm132_vm5, %v123_v40, %v125_v15  ;;  %v134_v41 = vsel %vm132_vm5, %v125_v15, %v127_v14  ;;  %v823_v15 = vld.sshfl [vmem:[#allocation1 + $0x18] sm:$0xff pattern:$0x75316420]  ;;  %v942_v40 = vrot.slane %v921_v23, 4 }
  0xfb   :  { %v243_v43 = vpop.permute.xlu2 %242  ;;  %2696 = vmatpush.msk.msra.mxu0 %vm140_vm6, %v133_v27  ;;  %2698 = vmatpush.msk.msra.mxu1 %vm140_vm6, %v134_v41 }
  0xfc   :  { %2697 = vmatmul.msk.f32.vlgmr.msra.gmra.mxu0 %vm137_vm7, %v108_v56  ;;  %2699 = vmatmul.msk.f32.vlgmr.msra.gmra.mxu1 %vm137_vm7, %v108_v56 }
 0x101   :  { %1809 = vrot.lane.b32.xlu1 %v501_v32, %s2877_s16 }
 0x102   :  { %v129_v18 = vpop.permute.xlu0 %128 }
 0x103   :  { %v247_v57 = vpop.permute.xlu2 %246  ;;  %v135_v21 = vsel %vm132_vm5, %v127_v14, %v129_v18  ;;  %v136_v58 = vsel %vm132_vm5, %v129_v18, %v131_v6 }
 0x104   :  { %2700 = vmatpush.msk.msra.mxu2 %vm140_vm6, %v135_v21  ;;  %2702 = vmatpush.msk.msra.mxu3 %vm140_vm6, %v136_v58 }
 0x105   :  { %2701 = vmatmul.msk.f32.vlgmr.msra.gmra.mxu2 %vm137_vm7, %v108_v56  ;;  %2703 = vmatmul.msk.f32.vlgmr.msra.gmra.mxu3 %vm137_vm7, %v108_v56  ;;  %v684_v56 = vld.sshfl [vmem:[#allocation1] sm:$0xff pattern:$0x75316420] }
 0x109   :  { %2047 = vrot.lane.b32.xlu1 %v783_v59, %s2884_s27 }
 0x10a   :  { %v245_v32 = vpop.permute.xlu0 %244 }
 0x10b   :  { %v251_v60 = vpop.permute.xlu1 %250  ;;  %v391_v61 = vpop.permute.xlu2 %390  ;;  %v253_v63 = vsel %vm252_vm8, %v243_v43, %v245_v32  ;;  %v254_v7 = vsel %vm252_vm8, %v245_v32, %v247_v57 }
 0x10c   :  { %2704 = vmatpush.msk.msrb.mxu0 %vm140_vm6, %v253_v63  ;;  %2706 = vmatpush.msk.msrb.mxu1 %vm140_vm6, %v254_v7 }
 0x10d   :  { %2705 = vmatmul.msk.f32.vlgmr.msrb.gmra.mxu0 %vm137_vm7, %v3026_v37  ;;  %2707 = vmatmul.msk.f32.vlgmr.msrb.gmra.mxu1 %vm137_vm7, %v3026_v37 }
 0x111   :  { %2187 = vrot.lane.b32.xlu1 %v921_v23, %s2883_s26  ;;  %v919_v23 = vperm.slane %v2947_v1, 6 }
 0x112   :  { %v249_v9 = vpop.permute.xlu0 %248 }
 0x113   :  { %v399_v12 = vpop.permute.xlu1 %398  ;;  %v397_v13 = vpop.permute.xlu2 %396  ;;  %v255_v17 = vsel %vm252_vm8, %v247_v57, %v249_v9  ;;  %v256_v19 = vsel %vm252_vm8, %v249_v9, %v251_v60  ;;  %v822_v60 = vld.sshfl [vmem:[#allocation1 + $0x10] sm:$0xff pattern:$0x75316420] }
 0x114   :  { %2708 = vmatpush.msk.msrb.mxu2 %vm140_vm6, %v255_v17  ;;  %2710 = vmatpush.msk.msrb.mxu3 %vm140_vm6, %v256_v19  ;;  %v404_v20 = vsel %vm400_vm9, %v397_v13, %v399_v12  ;;  %v1379_v12 = vld [vmem:[%s3942_s4] sm:$0x3f] }
 0x115   :  { %2709 = vmatmul.msk.f32.vlgmr.msrb.gmra.mxu2 %vm137_vm7, %v3026_v37  ;;  %2711 = vmatmul.msk.f32.vlgmr.msrb.gmra.mxu3 %vm137_vm7, %v3026_v37  ;;  %v782_v37 = vperm.slane %v2942_v0, 5 }
 0x116   :  { %2718 = vmatpush.msk.msra.mxu3 %vm140_vm6, %v404_v20 }
 0x117   :  { %v807_v51 = vsel %vm59_vm0, %v782_v37, %v805_v42 }
 0x11a   :  { %v393_v24 = vpop.permute.xlu0 %392 }
 0x11b   :  { %v395_v26 = vpop.permute.xlu1 %394  ;;  %v545_v29 = vpop.permute.xlu2 %544  ;;  %v401_v31 = vsel %vm400_vm9, %v391_v61, %v393_v24 }
 0x11c   :  { %v403_v33 = vsel %vm400_vm9, %v395_v26, %v397_v13  ;;  %v402_v34 = vsel %vm400_vm9, %v393_v24, %v395_v26  ;;  %2712 = vmatpush.msk.msra.mxu0 %vm140_vm6, %v401_v31  ;;  %v2889_v13 = vmov 0   ;;  %v3959_v24 = vperm.slane %v2942_v0, 6 }
 0x11d   :  { %2716 = vmatpush.msk.msra.mxu2 %vm140_vm6, %v403_v33  ;;  %2714 = vmatpush.msk.msra.mxu1 %vm140_vm6, %v402_v34  ;;  %v941_v26 = vrot.slane %v919_v23, 4 }
 0x11e   :  { %2713 = vmatmul.msk.f32.vlgmr.msra.gmra.mxu0 %vm137_vm7, %v3116_v22  ;;  %2715 = vmatmul.msk.f32.vlgmr.msra.gmra.mxu1 %vm137_vm7, %v3116_v22 }
 0x11f   :  { %2717 = vmatmul.msk.f32.vlgmr.msra.gmra.mxu2 %vm137_vm7, %v3116_v22  ;;  %2719 = vmatmul.msk.f32.vlgmr.msra.gmra.mxu3 %vm137_vm7, %v3116_v22  ;;  %v685_v22 = vld.sshfl [vmem:[#allocation1 + $0x8] sm:$0xff pattern:$0x75316420]  ;;  %v943_v34 = vsel %vm59_vm0, %v3959_v24, %v941_v26 }
 0x120   :  { %2861 = vset.pattern.permute.xlu2 %v2889_v13  ;;  %2862 = vset.pattern.permute.xlu0 %v2889_v13 }
 0x121   :  { %1382 = vperm.xlu2 %2861, %v1379_v12  }
 0x122   :  { %v787_v46 = vpop.permute.xlu0 %786 }
 0x123   :  { %v551_v47 = vpop.permute.xlu1 %550  ;;  %v549_v48 = vpop.permute.xlu2 %548  ;;  %v792_v49 = vrot.slane %v787_v46, 4  ;;  %v1057_v46 = vperm.slane %v2954_v4, 7 }
 0x124   :  { %v556_v50 = vsel %vm552_vm10, %v549_v48, %v551_v47 }
 0x125   :  { %v795_v52 = vsel %vm59_vm0, %v792_v49, %v793_v39  ;;  %2726 = vmatpush.msk.msrb.mxu3 %vm140_vm6, %v556_v50  ;;  %v920_v39 = vperm.slane %v2966_v10, 6 }
 0x126   :  { %v796_v6 = vsel %vm517_vm4, %v795_v52, %v3131_v38  ;;  %v3954_v52 = vperm.slane %v2966_v10, 7 }
 0x127   :  { %2734 = vmatpush.msk.msra.mxu3 %vm140_vm6, %v3152_v55  ;;  %v811_v14 = vmul.f32 %v807_v51, %v796_v6  ;;  %v944_v55 = vsel %vm59_vm0, %v920_v39, %v942_v40  ;;  %v3304_v6 = vld [vmem:[%s3939_s1 + $0x28] sm:$0x3] }
 0x128   :  { %2727 = vmatmul.msk.f32.vlgmr.msrb.gmra.mxu3 %vm137_vm7, %v3123_v36 }
 0x129   :  { %2742 = vmatpush.msk.msrb.mxu3 %vm140_vm6, %v823_v15  ;;  %817 = vst [vmem:[#allocation1] ss:$2 sm:$0xff] %v811_v14  ;;  %1428 = vrot.lane.b32.xlu2 %v79_v3, %s2873_s13  ;;  %v3953_v14 = vperm.slane %v2942_v0, 7 }
 0x12a   :  { %v927_v27 = vpop.permute.xlu0 %926 }
 0x12b   :  { %v543_v41 = vpop.permute.xlu1 %542  ;;  %v925_v43 = vpop.permute.xlu2 %924  ;;  %v930_v18 = vrot.slane %v927_v27, 4 }
 0x12c   :  { %v553_v38 = vsel %vm552_vm10, %v543_v41, %v545_v29  ;;  %v929_v57 = vrot.slane %v925_v43, 4 }
 0x12d   :  { %2720 = vmatpush.msk.msrb.mxu0 %vm140_vm6, %v553_v38 }
 0x12e   :  { %2721 = vmatmul.msk.f32.vlgmr.msrb.gmra.mxu0 %vm137_vm7, %v3123_v36  ;;  %v933_v21 = vsel %vm59_vm0, %v929_v57, %v930_v18  ;;  %v3952_v18 = vperm.slane %v3304_v6, 0 }
 0x12f   :  { %2728 = vmatpush.msk.msra.mxu0 %vm140_vm6, %v684_v56  ;;  %v934_v58 = vsel %vm365_vm3, %v933_v21, %v927_v27  ;;  %v3309_v56 = vld [vmem:[%s3939_s1 + $0x38] sm:$0x3] }
 0x130   :  { %v820_v59 = vld.sshfl [vmem:[#allocation1] sm:$0xff pattern:$0x75316420]  ;;  %v948_v32 = vmul.f32 %v944_v55, %v934_v58  ;;  %v821_v9 = vld.sshfl [vmem:[#allocation1 + $0x8] sm:$0xff pattern:$0x75316420] }
 0x131   :  { %2736 = vmatpush.msk.msrb.mxu0 %vm140_vm6, %v820_v59  ;;  %1430 = vrot.lane.b32.xlu2 %v80_v16, %s2873_s13  ;;  %v3956_v38 = vperm.slane %v3309_v56, 0  ;;  %v3332_v16 = vld [vmem:[%s3939_s1 + $0x30] sm:$0x3] }
 0x132   :  { %955 = vst [vmem:[#allocation1 + $0x10] ss:$2 sm:$0xff] %v948_v32  ;;  %v1061_v20 = vpop.permute.xlu0 %1060 }
 0x133   :  { %v547_v61 = vpop.permute.xlu1 %546  ;;  %v814_v17 = vpop.permute.xlu2 %813  ;;  %v1065_v3 = vrot.slane %v1061_v20, 4  ;;  %v1214_v12 = vrot.slane %v3956_v38, 4 }
 0x134   :  { %v554_v63 = vsel %vm552_vm10, %v545_v29, %v547_v61  ;;  %v555_v7 = vsel %vm552_vm10, %v547_v61, %v549_v48  ;;  %v3958_v48 = vperm.slane %v2947_v1, 7 }
 0x135   :  { %2722 = vmatpush.msk.msrb.mxu1 %vm140_vm6, %v554_v63  ;;  %2724 = vmatpush.msk.msrb.mxu2 %vm140_vm6, %v555_v7  ;;  %v3957_v7 = vperm.slane %v3332_v16, 0 }
 0x136   :  { %2723 = vmatmul.msk.f32.vlgmr.msrb.gmra.mxu1 %vm137_vm7, %v3123_v36  ;;  %2725 = vmatmul.msk.f32.vlgmr.msrb.gmra.mxu2 %vm137_vm7, %v3123_v36  ;;  %v1077_v15 = vrot.slane %v3958_v48, 4 }
 0x137   :  { %2730 = vmatpush.msk.msra.mxu1 %vm140_vm6, %v685_v22  ;;  %2732 = vmatpush.msk.msra.mxu2 %vm140_vm6, %v3146_v53  ;;  %v1078_v22 = vrot.slane %v1057_v46, 4 }
 0x138   :  { %v1079_v55 = vsel %vm59_vm0, %v3953_v14, %v1077_v15 }
 0x139   :  { %2738 = vmatpush.msk.msrb.mxu1 %vm140_vm6, %v821_v9  ;;  %2740 = vmatpush.msk.msrb.mxu2 %vm140_vm6, %v822_v60  ;;  %v959_v19 = vld.sshfl [vmem:[#allocation1 + $0x18] sm:$0xff pattern:$0x75316420]  ;;  %v958_v53 = vld.sshfl [vmem:[#allocation1 + $0x10] sm:$0xff pattern:$0x75316420] }
 0x13a   :  { %v950_v42 = vpop.permute.xlu0 %949  ;;  %v1213_v9 = vrot.slane %v3952_v18, 4  ;;  %1432 = vrot.lane.b32.xlu2 %v81_v8, %s2873_s13 }
 0x13b   :  { %v678_v36 = vpop.permute.xlu1 %677  ;;  %v1059_v33 = vpop.permute.xlu2 %1058 }
 0x13c   :  { %2729 = vmatmul.msk.f32.vlgmr.msra.gmra.mxu0 %vm137_vm7, %v678_v36  ;;  %2735 = vmatmul.msk.f32.vlgmr.msra.gmra.mxu3 %vm137_vm7, %v678_v36  ;;  %v1064_v50 = vrot.slane %v1059_v33, 4 }
 0x13d   :  { %2750 = vmatpush.msk.msra.mxu3 %vm140_vm6, %v959_v19 }
 0x13e   :  { %2731 = vmatmul.msk.f32.vlgmr.msra.gmra.mxu1 %vm137_vm7, %v678_v36  ;;  %2733 = vmatmul.msk.f32.vlgmr.msra.gmra.mxu2 %vm137_vm7, %v678_v36  ;;  %v1067_v40 = vsel %vm59_vm0, %v1064_v50, %v1065_v3 }
 0x13f   :  { %2748 = vmatpush.msk.msra.mxu2 %vm140_vm6, %v958_v53  ;;  %v1068_v21 = vsel %vm96_vm1, %v1067_v40, %v1061_v20 }
 0x140   :  { %v1083_v13 = vmul.f32 %v1079_v55, %v1068_v21 }
 0x142   :  { %v1195_v32 = vpop.permute.xlu0 %1194  ;;  %1426 = vrot.lane.b32.xlu2 %v78_v2, %s2873_s13 }
 0x143   :  { %v923_v29 = vpop.permute.xlu1 %922  ;;  %v1199_v60 = vpop.permute.xlu2 %1198  ;;  %v1200_v36 = vrot.slane %v1195_v32, 4 }
 0x144   :  { %v928_v31 = vrot.slane %v923_v29, 4  ;;  %2737 = vmatmul.msk.f32.vlgmr.msrb.gmra.mxu0 %vm137_vm7, %v814_v17  ;;  %2743 = vmatmul.msk.f32.vlgmr.msrb.gmra.mxu3 %vm137_vm7, %v814_v17  ;;  %v1202_v20 = vrot.slane %v1199_v60, 4 }
 0x146   :  { %v931_v47 = vsel %vm59_vm0, %v928_v31, %v929_v57  ;;  %2739 = vmatmul.msk.f32.vlgmr.msrb.gmra.mxu1 %vm137_vm7, %v814_v17  ;;  %2741 = vmatmul.msk.f32.vlgmr.msrb.gmra.mxu2 %vm137_vm7, %v814_v17  ;;  %v1080_v57 = vsel %vm59_vm0, %v3954_v52, %v1078_v22  ;;  %v1216_v31 = vsel %vm59_vm0, %v3957_v7, %v1214_v12 }
 0x147   :  { %v932_v49 = vsel %vm365_vm3, %v931_v47, %v925_v43  ;;  %v3322_v43 = vld [vmem:[%s3939_s1 + $0x20] sm:$0x3] }
 0x148   :  { %v947_v51 = vmul.f32 %v943_v34, %v932_v49  ;;  %v3955_v61 = vperm.slane %v3322_v43, 0 }
 0x14a   :  { %953 = vst [vmem:[#allocation1] ss:$2 sm:$0xff] %v947_v51  ;;  %v1215_v29 = vsel %vm59_vm0, %v3955_v61, %v1213_v9  ;;  %1411 = vrot.lane.b32.xlu2 %v52_v11, %s2874_s14 }
 0x14b   :  { %v1063_v27 = vpop.permute.xlu1 %1062 }
 0x14c   :  { %v1066_v41 = vrot.slane %v1063_v27, 4  ;;  %2751 = vmatmul.msk.f32.vlgmr.msra.gmra.mxu3 %vm137_vm7, %v950_v42 }
 0x14e   :  { %v1069_v58 = vsel %vm59_vm0, %v1065_v3, %v1066_v41  ;;  %2749 = vmatmul.msk.f32.vlgmr.msra.gmra.mxu2 %vm137_vm7, %v950_v42  ;;  %v1222_v41 = vpop.permute.xlu2 %1221 }
 0x14f   :  { %v1070_v59 = vsel %vm96_vm1, %v1069_v58, %v1063_v27 }
 0x150   :  { %v1084_v63 = vmul.f32 %v1080_v57, %v1070_v59 }
 0x151   :  { %v956_v17 = vld.sshfl [vmem:[#allocation1] sm:$0xff pattern:$0x75316420]  ;;  %v957_v19 = vld.sshfl [vmem:[#allocation1 + $0x8] sm:$0xff pattern:$0x75316420] }
 0x152   :  { %1091 = vst [vmem:[#allocation1 + $0x10] ss:$2 sm:$0xff] %v1084_v63  ;;  %2744 = vmatpush.msk.msra.mxu0 %vm140_vm6, %v956_v17  ;;  %2746 = vmatpush.msk.msra.mxu1 %vm140_vm6, %v957_v19 }
 0x153   :  { %1089 = vst [vmem:[#allocation1] ss:$2 sm:$0xff] %v1083_v13  ;;  %v1197_v53 = vpop.permute.xlu1 %1196  ;;  %2745 = vmatmul.msk.f32.vlgmr.msra.gmra.mxu0 %vm137_vm7, %v950_v42  ;;  %2747 = vmatmul.msk.f32.vlgmr.msra.gmra.mxu1 %vm137_vm7, %v950_v42 }
 0x154   :  { %v1201_v26 = vrot.slane %v1197_v53, 4  ;;  %1405 = vrot.lane.b32.xlu2 %v49_v5, %s2874_s14 }
 0x156   :  { %v1203_v33 = vsel %vm59_vm0, %v1200_v36, %v1201_v26  ;;  %v1205_v34 = vsel %vm59_vm0, %v1201_v26, %v1202_v20  ;;  %vm2589_vm0 = vcmask 1041409  }
 0x157   :  { %v1204_v47 = vsel %vm68_vm2, %v1203_v33, %v1197_v53  ;;  %v1206_v42 = vsel %vm68_vm2, %v1205_v34, %v1199_v60  ;;  %v3418_v53 = vld [vmem:[#allocation3 + $0x28] sm:$0x3f] }
 0x158   :  { %v1219_v3 = vmul.f32 %v1215_v29, %v1204_v47  ;;  %v1220_v49 = vmul.f32 %v1216_v31, %v1206_v42 }
 0x159   :  { %v1094_v50 = vld.sshfl [vmem:[#allocation1 + $0x10] sm:$0xff pattern:$0x75316420]  ;;  %v1095_v8 = vld.sshfl [vmem:[#allocation1 + $0x18] sm:$0xff pattern:$0x75316420] }
 0x15a   :  { %v1092_v51 = vld.sshfl [vmem:[#allocation1] sm:$0xff pattern:$0x75316420]  ;;  %v1093_v22 = vld.sshfl [vmem:[#allocation1 + $0x8] sm:$0xff pattern:$0x75316420]  ;;  %2756 = vmatpush.msk.msrb.mxu2 %vm140_vm6, %v1094_v50  ;;  %2758 = vmatpush.msk.msrb.mxu3 %vm140_vm6, %v1095_v8 }
 0x15b   :  { %2752 = vmatpush.msk.msrb.mxu0 %vm140_vm6, %v1092_v51  ;;  %2754 = vmatpush.msk.msrb.mxu1 %vm140_vm6, %v1093_v22  ;;  %1225 = vst [vmem:[#allocation1] ss:$2 sm:$0xff] %v1219_v3  ;;  %v1086_v15 = vpop.permute.xlu1 %1085 }
 0x15c   :  { %1227 = vst [vmem:[#allocation1 + $0x10] ss:$2 sm:$0xff] %v1220_v49  ;;  %2753 = vmatmul.msk.f32.vlgmr.msrb.gmra.mxu0 %vm137_vm7, %v1086_v15  ;;  %2755 = vmatmul.msk.f32.vlgmr.msrb.gmra.mxu1 %vm137_vm7, %v1086_v15 }
 0x15d   :  { %2757 = vmatmul.msk.f32.vlgmr.msrb.gmra.mxu2 %vm137_vm7, %v1086_v15  ;;  %2759 = vmatmul.msk.f32.vlgmr.msrb.gmra.mxu3 %vm137_vm7, %v1086_v15 }
 0x15e   :  { %1673 = vrot.lane.b32.xlu2 %v349_v28, %s2876_s15 }
 0x162   :  { %v1228_v40 = vld.sshfl [vmem:[#allocation1] sm:$0xff pattern:$0x75316420]  ;;  %v1229_v27 = vld.sshfl [vmem:[#allocation1 + $0x8] sm:$0xff pattern:$0x75316420] }
 0x163   :  { %2760 = vmatpush.msk.msra.mxu0 %vm140_vm6, %v1228_v40  ;;  %2762 = vmatpush.msk.msra.mxu1 %vm140_vm6, %v1229_v27  ;;  %v1230_v57 = vld.sshfl [vmem:[#allocation1 + $0x10] sm:$0xff pattern:$0x75316420]  ;;  %v1231_v55 = vld.sshfl [vmem:[#allocation1 + $0x18] sm:$0xff pattern:$0x75316420] }
 0x164   :  { %2764 = vmatpush.msk.msra.mxu2 %vm140_vm6, %v1230_v57  ;;  %2766 = vmatpush.msk.msra.mxu3 %vm140_vm6, %v1231_v55 }
 0x165   :  { %2761 = vmatmul.msk.f32.vlgmr.msra.gmra.mxu0 %vm137_vm7, %v1222_v41  ;;  %2763 = vmatmul.msk.f32.vlgmr.msra.gmra.mxu1 %vm137_vm7, %v1222_v41 }
 0x166   :  { %2765 = vmatmul.msk.f32.vlgmr.msra.gmra.mxu2 %vm137_vm7, %v1222_v41  ;;  %2767 = vmatmul.msk.f32.vlgmr.msra.gmra.mxu3 %vm137_vm7, %v1222_v41 }
 0x167   :  { %1807 = vrot.lane.b32.xlu2 %v500_v25, %s2877_s16 }
 0x16f   :  { %1805 = vrot.lane.b32.xlu2 %v499_v30, %s2877_s16 }
 0x177   :  { %2051 = vrot.lane.b32.xlu2 %v785_v44, %s2884_s27  ;;  %v3412_v44 = vld [vmem:[%s3943_s5] sm:$0x3f]  ;;  %s2890_s5 = smov 98  }
 0x179   :  { %v186_v11 = vpop.f32.mrf.mxu1  ;;  %v166_v21 = vpop.f32.mrf.mxu0 }
 0x17b   :  { %v3401_v2 = vpop.permute.xlu2 %1382 }
 0x17f   :  { %1448 = vrot.lane.b32.xlu2 %v3412_v44, %s2878_s19  ;;  %s2891_s19 = smov 92  }
 0x183   :  { %v1429_v5 = vpop.permute.xlu2 %1428 }
 0x188   :  { %v206_v58 = vpop.f32.mrf.mxu2  ;;  %v226_v59 = vpop.f32.mrf.mxu3 }
 0x18a   :  { %v304_v28 = vpop.f32.mrf.mxu1  ;;  %v284_v60 = vpop.f32.mrf.mxu0 }
 0x18b   :  { %v3403_v32 = vpop.permute.xlu2 %1430  ;;  %v285_v41 = vadd.f32 %v284_v60, %v166_v21  ;;  %v305_v57 = vadd.f32 %v304_v28, %v186_v11 }
 0x18c   :  { %v3407_v25 = vsel %vm96_vm1, %v1429_v5, %v3403_v32 }
 0x194   :  { %v3416_v13 = vpop.permute.xlu2 %1432 }
 0x198   :  { %v324_v30 = vpop.f32.mrf.mxu2  ;;  %v344_v63 = vpop.f32.mrf.mxu3 }
 0x199   :  { %v325_v52 = vadd.f32 %v324_v30, %v206_v58  ;;  %v345_v61 = vadd.f32 %v344_v63, %v226_v59 }
 0x19b   :  { %v452_v9 = vpop.f32.mrf.mxu1  ;;  %v432_v12 = vpop.f32.mrf.mxu0 }
 0x19c   :  { %v1427_v26 = vpop.permute.xlu2 %1426  ;;  %v495_v55 = vadd.f32 %v432_v12, %v285_v41 }
 0x19d   :  { %v3421_v29 = vsel %vm96_vm1, %v1427_v26, %v1429_v5  ;;  %v1442_v31 = vmul.f32 %v1427_v26, %v3418_v53  ;;  %v496_v5 = vadd.f32 %v452_v9, %v305_v57  ;;  %v1408_v57 = vpop.permute.xlu0 %1407 }
 0x19f   :  { %1455 = vrot.lane.b32.xlu2 %v1442_v31, %s2881_s0 }
 0x1a2   :  { %v472_v17 = vpop.f32.mrf.mxu2  ;;  %v492_v19 = vpop.f32.mrf.mxu3 }
 0x1a3   :  { %v497_v24 = vadd.f32 %v472_v17, %v325_v52  ;;  %v498_v21 = vadd.f32 %v492_v19, %v345_v61 }
 0x1a4   :  { %v3428_v27 = vpop.permute.xlu2 %1411 }
 0x1a7   :  { %2185 = vrot.lane.b32.xlu2 %v920_v39, %s2883_s26 }
 0x1ab   :  { %v584_v20 = vpop.f32.mrf.mxu0  ;;  %v644_v34 = vpop.f32.mrf.mxu3 }
 0x1ac   :  { %v647_v54 = vadd.f32 %v584_v20, %v495_v55  ;;  %v650_v60 = vadd.f32 %v644_v34, %v498_v21 }
 0x1ae   :  { %v1406_v14 = vpop.permute.xlu2 %1405 }
 0x1af   :  { %v1421_v38 = vmul.f32 %v1406_v14, %v3418_v53 }
 0x1b1   :  { %1565 = vrot.lane.b32.xlu2 %v1421_v38, %s2882_s2 }
 0x1b3   :  { %v604_v36 = vpop.f32.mrf.mxu1 }
 0x1b4   :  { %v648_v62 = vadd.f32 %v604_v36, %v496_v5 }
 0x1b8   :  { %v3436_v38 = vpop.permute.xlu2 %1673 }
 0x1b9   :  { %v624_v33 = vpop.f32.mrf.mxu2  ;;  %v715_v47 = vpop.f32.mrf.mxu0 }
 0x1ba   :  { %v778_v45 = vadd.f32 %v715_v47, %v647_v54  ;;  %v649_v9 = vadd.f32 %v624_v33, %v497_v24 }
 0x1bb   :  { %v735_v42 = vpop.f32.mrf.mxu1 }
 0x1bc   :  { %v779_v18 = vadd.f32 %v735_v42, %v648_v62 }
 0x1bf   :  { %v775_v3 = vpop.f32.mrf.mxu3 }
 0x1c0   :  { %v781_v62 = vadd.f32 %v775_v3, %v650_v60  ;;  %v1672_v60 = vpop.permute.xlu0 %1671 }
 0x1c1   :  { %v755_v49 = vpop.f32.mrf.mxu2  ;;  %v851_v50 = vpop.f32.mrf.mxu0 }
 0x1c2   :  { %v914_v7 = vadd.f32 %v851_v50, %v778_v45  ;;  %v780_v47 = vadd.f32 %v755_v49, %v649_v9  ;;  %v1808_v55 = vpop.permute.xlu2 %1807  ;;  %v3465_v9 = vpop.permute.xlu1 %1409 }
 0x1c3   :  { %v871_v8 = vpop.f32.mrf.mxu1 }
 0x1c4   :  { %v915_v48 = vadd.f32 %v871_v8, %v779_v18 }
 0x1c7   :  { %v911_v51 = vpop.f32.mrf.mxu3 }
 0x1c8   :  { %v917_v52 = vadd.f32 %v911_v51, %v781_v62 }
 0x1c9   :  { %v891_v22 = vpop.f32.mrf.mxu2 }
 0x1ca   :  { %v916_v18 = vadd.f32 %v891_v22, %v780_v47  ;;  %v3478_v62 = vpop.permute.xlu1 %1675 }
 0x1cf   :  { %v1047_v26 = vpop.f32.mrf.mxu3 }
 0x1d0   :  { %v987_v15 = vpop.f32.mrf.mxu0  ;;  %v1007_v40 = vpop.f32.mrf.mxu1 }
 0x1d1   :  { %v1027_v31 = vpop.f32.mrf.mxu2  ;;  %v1050_v11 = vadd.f32 %v987_v15, %v914_v7  ;;  %v1051_v28 = vadd.f32 %v1007_v40, %v915_v48  ;;  %v1053_v48 = vadd.f32 %v1047_v26, %v917_v52 }
 0x1d2   :  { %v1052_v61 = vadd.f32 %v1027_v31, %v916_v18  ;;  %v3462_v31 = vsel %vm68_vm2, %v1406_v14, %v1408_v57  ;;  %v1806_v14 = vpop.permute.xlu2 %1805  ;;  %v3961_v18 = vperm.slane %v2947_v1, 7 }
 0x1d9   :  { %v1123_v35 = vpop.f32.mrf.mxu0  ;;  %v1143_v39 = vpop.f32.mrf.mxu1 }
 0x1da   :  { %v1186_v20 = vadd.f32 %v1123_v35, %v1050_v11  ;;  %v1187_v54 = vadd.f32 %v1143_v39, %v1051_v28 }
 0x1e0   :  { %v1163_v12 = vpop.f32.mrf.mxu2  ;;  %v1183_v36 = vpop.f32.mrf.mxu3 }
 0x1e1   :  { %v1188_v7 = vadd.f32 %v1163_v12, %v1052_v61  ;;  %v1189_v63 = vadd.f32 %v1183_v36, %v1053_v48  ;;  %v3469_v12 = vsel %vm365_vm3, %v1672_v60, %v3436_v38  ;;  %v3473_v36 = vsel %vm68_vm2, %v1408_v57, %v3465_v9 }
 0x1e2   :  { %v1259_v58 = vpop.f32.mrf.mxu0  ;;  %v1279_v59 = vpop.f32.mrf.mxu1  ;;  %v3964_v48 = vperm.slane %v3322_v43, 0  ;;  %v1821_v61 = vmul.f32 %v1806_v14, %v3418_v53 }
 0x1e3   :  { %v3432_v30 = vadd.f32 %v1259_v58, %v1186_v20  ;;  %v3434_v45 = vadd.f32 %v1279_v59, %v1187_v54  ;;  %v3476_v20 = vsel %vm517_vm4, %v1806_v14, %v1808_v55  ;;  %v1670_v54 = vpop.permute.xlu0 %1669  ;;  %v3486_v58 = vpop.permute.xlu1 %1809 }
 0x1e4   :  { %v3481_v47 = vsel %vm365_vm3, %v1670_v54, %v1672_v60  ;;  %v3490_v59 = vsel %vm517_vm4, %v1808_v55, %v3486_v58  ;;  %v1685_v52 = vmul.f32 %v1670_v54, %v3418_v53  ;;  %v1368_v55 = vld [vmem:[%s3944_s3] sm:$0x3f]  ;;  %s2892_s3 = smov 86  }
 0x1e5   :  { %v1337_v24 = vmul.f32 %v3432_v30, %v3432_v30  ;;  %v1338_v35 = vmul.f32 %v3434_v45, %v3434_v45  ;;  %v1327_v17 = vsel %vm1326_vm11, %v3432_v30, 0.0  ;;  %v1328_v19 = vsel %vm1326_vm11, %v3434_v45, 0.0 }
 0x1e6   :  { %v1329_v8 = vadd.f32 %v1328_v19, %v1327_v17 }
 0x1e7   :  { %v1341_v49 = vsel %vm1326_vm11, %v1337_v24, 0.0  ;;  %v1342_v50 = vsel %vm1326_vm11, %v1338_v35, 0.0 }
 0x1e8   :  { %v1343_v41 = vadd.f32 %v1342_v50, %v1341_v49 }
 0x1e9   :  { %v1299_v33 = vpop.f32.mrf.mxu2  ;;  %v1319_v34 = vpop.f32.mrf.mxu3 }
 0x1ea   :  { %v3446_v42 = vadd.f32 %v1299_v33, %v1188_v7  ;;  %v3448_v3 = vadd.f32 %v1319_v34, %v1189_v63 }
 0x1eb   :  { %v3525_v24 = vpop.permute.xlu1 %2047  ;;  %v3538_v7 = vpop.permute.xlu0 %1811 }
 0x1ec   :  { %v1339_v51 = vmul.f32 %v3446_v42, %v3446_v42  ;;  %v1330_v22 = vsel %vm1326_vm11, %v3446_v42, 0.0  ;;  %v1340_v15 = vmul.f32 %v3448_v3, %v3448_v3  ;;  %v1332_v5 = vsel %vm1326_vm11, %v3448_v3, 0.0 }
 0x1ed   :  { %v1331_v40 = vadd.f32 %v1330_v22, %v1329_v8 }
 0x1ee   :  { %v1344_v26 = vsel %vm1326_vm11, %v1339_v51, 0.0  ;;  %v1346_v11 = vsel %vm1326_vm11, %v1340_v15, 0.0 }
 0x1ef   :  { %v1333_v39 = vadd.f32 %v1332_v5, %v1331_v40  ;;  %v1345_v21 = vadd.f32 %v1344_v26, %v1343_v41 }
 0x1f1   :  { %1334 = vadd.xlane.f32.xlu0 %v1333_v39  ;;  %v1347_v28 = vadd.f32 %v1346_v11, %v1345_v21  ;;  %v3965_v39 = vperm.slane %v2966_v10, 7  ;;  %v3966_v21 = vperm.slane %v2942_v0, 7  ;;  %v3967_v11 = vperm.slane %v3304_v6, 0 }
 0x1f3   :  { %1348 = vadd.xlane.f32.xlu1 %v1347_v28  ;;  %v3533_v53 = vpop.permute.xlu1 %2187  ;;  %v3540_v63 = vpop.permute.xlu0 %2049 }
 0x205   :  { %2045 = vrot.lane.b32.xlu0 %v782_v37, %s2884_s27  ;;  %v3960_v37 = vperm.slane %v2942_v0, 6 }
 0x20c   :  { %2323 = vrot.lane.b32.xlu1 %v1057_v46, %s2881_s0  ;;  %v3962_v46 = vperm.slane %v3332_v16, 0  ;;  %v3523_v16 = vld [vmem:[#allocation3 + $0x20] sm:$0x3f] }
 0x20d   :  { %2183 = vrot.lane.b32.xlu0 %v919_v23, %s2883_s26  ;;  %v3963_v23 = vperm.slane %v3309_v56, 0  ;;  %v3527_v56 = vpop.permute.xlu2 %2051  ;;  %v2201_v35 = vmul.f32 %v3533_v53, %v3523_v16 }
 0x20e   :  { %v2065_v43 = vmul.f32 %v3527_v56, %v3523_v16 }
 0x214   :  { %1690 = vrot.lane.b32.xlu1 %v3412_v44, %s2886_s29 }
 0x215   :  { %2181 = vrot.lane.b32.xlu0 %v3960_v37, %s2883_s26  ;;  %v3555_v28 = vpop.permute.xlu2 %1448 }
 0x21c   :  { %1697 = vrot.lane.b32.xlu1 %v1685_v52, %s2883_s26 }
 0x21d   :  { %2319 = vrot.lane.b32.xlu0 %v3961_v18, %s2881_s0  ;;  %v3557_v60 = vpop.permute.xlu2 %1455 }
 0x224   :  { %2457 = vrot.lane.b32.xlu1 %v3962_v46, %s2882_s2 }
 0x225   :  { %2459 = vrot.lane.b32.xlu0 %v3963_v23, %s2882_s2  ;;  %v3559_v14 = vpop.permute.xlu2 %2185 }
 0x22c   :  { %2453 = vrot.lane.b32.xlu1 %v3964_v48, %s2882_s2 }
 0x22d   :  { %1826 = vrot.lane.b32.xlu0 %v3412_v44, %s2885_s28  ;;  %v3561_v54 = vpop.permute.xlu2 %1565 }
 0x234   :  { %1945 = vrot.lane.b32.xlu1 %v3412_v44, %s2888_s9 }
 0x235   :  { %1833 = vrot.lane.b32.xlu0 %v1821_v61, %s2884_s27 }
 0x23c   :  { %2066 = vrot.lane.b32.xlu1 %v3412_v44, %s2890_s5 }
 0x23d   :  { %2081 = vrot.lane.b32.xlu0 %v2065_v43, %s2877_s16 }
 0x244   :  { %2202 = vrot.lane.b32.xlu1 %v3412_v44, %s2891_s19 }
 0x245   :  { %2217 = vrot.lane.b32.xlu0 %v2201_v35, %s2876_s15 }
 0x264   :  { %v1335_v17 = vpop.xlane.xlu0 %1334 }
 0x265   :  { %v1336_v19 = vmul.f32 0.001953125, %v1335_v17 }
 0x266   :  { %v1349_v33 = vpop.xlane.xlu1 %1348 }
 0x267   :  { %v1350_v34 = vmul.f32 0.001953125, %v1349_v33  ;;  %v1351_v49 = vmul.f32 %v1336_v19, %v1336_v19  ;;  %v1353_v37 = vsub.f32 %v3432_v30, %v1336_v19  ;;  %v1354_v52 = vsub.f32 %v3434_v45, %v1336_v19 }
 0x268   :  { %v1355_v18 = vsub.f32 %v3446_v42, %v1336_v19  ;;  %v1356_v46 = vsub.f32 %v3448_v3, %v1336_v19  ;;  %v1436_v45 = vsel %vm96_vm1, %v3403_v32, %v3416_v13  ;;  %v1415_v42 = vsel %vm68_vm2, %v3465_v9, %v3428_v27 }
 0x269   :  { %v1352_v50 = vsub.f32 %v1350_v34, %v1351_v49  ;;  %v1679_v9 = vsel %vm365_vm3, %v3436_v38, %v3478_v62 }
 0x26b   :  { %v1357_v8 = vadd.f32 1e-05, %v1352_v50 }
 0x26d   :  { %2863 = vrsqrt.f32 %v1357_v8  ;;  %vm1364_vm13 = vweird.f32 %v1357_v8 }
 0x273   :  { %v2864_v51 = vpop.eup %2863 }
 0x274   :  { %v1359_v22 = vmul.f32 %v2864_v51, %v1357_v8  ;;  %vm1365_vm12 = vweird.f32 %v2864_v51 }
 0x275   :  { %vm1366_vm14 = vmor %vm1364_vm13, %vm1365_vm12 }
 0x276   :  { %v1360_v15 = vmul.f32 %v2864_v51, %v1359_v22 }
 0x278   :  { %v1361_v40 = vmul.f32 0.5, %v1360_v15 }
 0x27a   :  { %v1362_v41 = vsub.f32 1.5, %v1361_v40 }
 0x27c   :  { %v1363_v57 = vmul.f32 %v2864_v51, %v1362_v41  ;;  %v1815_v41 = vsel %vm517_vm4, %v3486_v58, %v3538_v7  ;;  %v2054_v58 = vsel %vm552_vm10, %v3525_v24, %v3540_v63 }
 0x27e   :  { %v1367_v5 = vsel %vm1366_vm14, %v2864_v51, %v1363_v57 }
 0x27f   :  { %v1369_v26 = vmul.f32 %v1368_v55, %v1367_v5 }
 0x281   :  { %1372 = vperm.xlu2 %2861, %v1369_v26  }
 0x289   :  { %2321 = vrot.lane.b32.xlu2 %v3965_v39, %s2881_s0 }
 0x291   :  { %2317 = vrot.lane.b32.xlu2 %v3966_v21, %s2881_s0  ;;  %v2191_v21 = vsel %vm400_vm9, %v3559_v14, %v3533_v53 }
 0x299   :  { %2455 = vrot.lane.b32.xlu2 %v3967_v11, %s2882_s2 }
 0x2db   :  { %v1373_v23 = vpop.permute.xlu2 %1372 }
 0x2dc   :  { %v1375_v48 = vmul.f32 %v1373_v23, %v1353_v37  ;;  %v1376_v6 = vmul.f32 %v1373_v23, %v1354_v52  ;;  %v1377_v61 = vmul.f32 %v1373_v23, %v1355_v18  ;;  %v1378_v43 = vmul.f32 %v1373_v23, %v1356_v46 }
 0x2de   :  { %v1385_v35 = vadd.f32 %v3401_v2, %v1375_v48  ;;  %v1386_v17 = vadd.f32 %v3401_v2, %v1376_v6  ;;  %v1387_v33 = vadd.f32 %v3401_v2, %v1377_v61  ;;  %v1388_v34 = vadd.f32 %v3401_v2, %v1378_v43 }
 0x2e0   :  { %1395 = vst [vmem:[#allocation3 + $0x10] sm:$0x3f] %v1385_v35 }
 0x2e1   :  { %1396 = vst [vmem:[#allocation3 + $0x8] sm:$0x3f] %v1386_v17 }
 0x2e2   :  { %1397 = vst [vmem:[#allocation3] sm:$0x3f] %v1387_v33 }
 0x2e3   :  { %1398 = vst [vmem:[#allocation3 + $0x18] sm:$0x3f] %v1388_v34  ;;  %v2322_v5 = vpop.permute.xlu2 %2321 }
 0x2e7   :  { %v3601_v51 = vld [vmem:[#allocation3 + $0x10] sm:$0x3f] }
 0x2e8   :  { %v3571_v30 = vld [vmem:[#allocation3 + $0x8] sm:$0x3f]  ;;  %v1443_v22 = vmul.f32 %v3421_v29, %v3601_v51  ;;  %v1822_v40 = vmul.f32 %v3476_v20, %v3601_v51  ;;  %v2055_v20 = vsel %vm552_vm10, %v3540_v63, %v3527_v56 }
 0x2e9   :  { %v3579_v3 = vld [vmem:[#allocation3] sm:$0x3f]  ;;  %v1444_v19 = vmul.f32 %v3407_v25, %v3571_v30  ;;  %v1423_v8 = vmul.f32 %v3473_v36, %v3571_v30  ;;  %v1823_v38 = vmul.f32 %v3490_v59, %v3571_v30  ;;  %v1422_v59 = vmul.f32 %v3462_v31, %v3601_v51 }
 0x2ea   :  { %v1445_v2 = vmul.f32 %v1436_v45, %v3579_v3  ;;  %v1424_v49 = vmul.f32 %v1415_v42, %v3579_v3  ;;  %v3588_v32 = vld [vmem:[#allocation3 + $0x18] sm:$0x3f]  ;;  %v1688_v25 = vmul.f32 %v1679_v9, %v3579_v3  ;;  %v2063_v26 = vmul.f32 %v2054_v58, %v3579_v3 }
 0x2eb   :  { %1459 = vrot.lane.b32.xlu1 %v1444_v19, %s2881_s0  ;;  %v1446_v50 = vmul.f32 %v3416_v13, %v3588_v32  ;;  %v1687_v13 = vmul.f32 %v3469_v12, %v3571_v30  ;;  %v1425_v36 = vmul.f32 %v3428_v27, %v3588_v32  ;;  %v1825_v15 = vmul.f32 %v3538_v7, %v3588_v32  ;;  %v2046_v12 = vpop.permute.xlu0 %2045  ;;  %v2318_v11 = vpop.permute.xlu2 %2317 }
 0x2ec   :  { %1461 = vrot.lane.b32.xlu0 %v1445_v2, %s2881_s0  ;;  %1571 = vrot.lane.b32.xlu2 %v1424_v49, %s2882_s2  ;;  %v1689_v29 = vmul.f32 %v3478_v62, %v3588_v32  ;;  %v1686_v27 = vmul.f32 %v3481_v47, %v3601_v51  ;;  %v2324_v62 = vpop.permute.xlu1 %2323  ;;  %v1824_v47 = vmul.f32 %v1815_v41, %v3579_v3 }
 0x2ed   :  { %v2337_v31 = vmul.f32 %v2324_v62, %v3523_v16  ;;  %v2064_v55 = vmul.f32 %v2055_v20, %v3588_v32  ;;  %v2061_v56 = vmul.f32 %v2046_v12, %v3601_v51  ;;  %v2200_v37 = vmul.f32 %v2191_v21, %v3588_v32 }
 0x2ee   :  { %v2327_v33 = vsel %vm132_vm5, %v2322_v5, %v2324_v62 }
 0x2ef   :  { %v2336_v45 = vmul.f32 %v2327_v33, %v3588_v32 }
 0x2f3   :  { %1463 = vrot.lane.b32.xlu1 %v1446_v50, %s2881_s0  ;;  %v2184_v57 = vpop.permute.xlu0 %2183  ;;  %v2456_v61 = vpop.permute.xlu2 %2455 }
 0x2f4   :  { %1703 = vrot.lane.b32.xlu2 %v1688_v25, %s2883_s26  ;;  %1569 = vrot.lane.b32.xlu0 %v1423_v8, %s2882_s2  ;;  %v3647_v39 = vpop.permute.xlu1 %1690  ;;  %v2190_v63 = vsel %vm400_vm9, %v2184_v57, %v3559_v14  ;;  %v2053_v14 = vsel %vm552_vm10, %v2046_v12, %v3525_v24  ;;  %v2333_v25 = vmul.f32 %v2318_v11, %v3601_v51 }
 0x2f5   :  { %v2199_v52 = vmul.f32 %v2190_v63, %v3579_v3  ;;  %v2062_v23 = vmul.f32 %v2053_v14, %v3571_v30 }
 0x2fb   :  { %1457 = vrot.lane.b32.xlu1 %v1443_v22, %s2881_s0  ;;  %v2182_v7 = vpop.permute.xlu0 %2181  ;;  %s2893_s0 = smov 80  }
 0x2fc   :  { %1837 = vrot.lane.b32.xlu2 %v1823_v38, %s2884_s27  ;;  %1701 = vrot.lane.b32.xlu0 %v1687_v13, %s2883_s26  ;;  %v3662_v46 = vpop.permute.xlu1 %1697  ;;  %v2197_v6 = vmul.f32 %v2182_v7, %v3601_v51  ;;  %v2189_v35 = vsel %vm400_vm9, %v2182_v7, %v2184_v57 }
 0x2fd   :  { %v2198_v34 = vmul.f32 %v2189_v35, %v3571_v30 }
 0x303   :  { %1573 = vrot.lane.b32.xlu1 %v1425_v36, %s2882_s2  ;;  %v2320_v18 = vpop.permute.xlu0 %2319 }
 0x304   :  { %1841 = vrot.lane.b32.xlu2 %v1825_v15, %s2884_s27  ;;  %1705 = vrot.lane.b32.xlu0 %v1689_v29, %s2883_s26  ;;  %v2326_v53 = vsel %vm132_vm5, %v2320_v18, %v2322_v5  ;;  %v2458_v43 = vpop.permute.xlu1 %2457  ;;  %v2325_v19 = vsel %vm132_vm5, %v2318_v11, %v2320_v18 }
 0x305   :  { %v2335_v48 = vmul.f32 %v2326_v53, %v3579_v3  ;;  %v2462_v24 = vsel %vm252_vm8, %v2456_v61, %v2458_v43  ;;  %v2334_v50 = vmul.f32 %v2325_v19, %v3571_v30 }
 0x306   :  { %v2471_v42 = vmul.f32 %v2462_v24, %v3579_v3 }
 0x30b   :  { %1567 = vrot.lane.b32.xlu1 %v1422_v59, %s2882_s2  ;;  %v2460_v17 = vpop.permute.xlu0 %2459 }
 0x30c   :  { %1835 = vrot.lane.b32.xlu2 %v1822_v40, %s2884_s27  ;;  %1699 = vrot.lane.b32.xlu0 %v1686_v27, %s2883_s26  ;;  %v2454_v2 = vpop.permute.xlu1 %2453  ;;  %v2473_v49 = vmul.f32 %v2460_v17, %v3523_v16  ;;  %v2463_v22 = vsel %vm252_vm8, %v2458_v43, %v2460_v17 }
 0x30d   :  { %v2461_v8 = vsel %vm252_vm8, %v2454_v2, %v2456_v61  ;;  %v2472_v36 = vmul.f32 %v2463_v22, %v3588_v32  ;;  %v2469_v12 = vmul.f32 %v2454_v2, %v3601_v51  ;;  %v3969_v2 = vperm.slane %v2947_v1, 4 }
 0x30e   :  { %v2470_v16 = vmul.f32 %v2461_v8, %v3571_v30 }
 0x313   :  { %1839 = vrot.lane.b32.xlu1 %v1824_v47, %s2884_s27  ;;  %v3684_v9 = vpop.permute.xlu0 %1826 }
 0x314   :  { %2079 = vrot.lane.b32.xlu2 %v2064_v55, %s2877_s16  ;;  %2353 = vrot.lane.b32.xlu0 %v2337_v31, %s2873_s13  ;;  %v3693_v38 = vpop.permute.xlu1 %1945 }
 0x31b   :  { %2338 = vrot.lane.b32.xlu1 %v3412_v44, %s2892_s3  ;;  %v1834_v13 = vpop.permute.xlu0 %1833 }
 0x31c   :  { %2077 = vrot.lane.b32.xlu0 %v2063_v26, %s2877_s16  ;;  %2073 = vrot.lane.b32.xlu2 %v2061_v56, %s2877_s16  ;;  %v3699_v29 = vpop.permute.xlu1 %2066 }
 0x323   :  { %2474 = vrot.lane.b32.xlu1 %v3412_v44, %s2893_s0  ;;  %v3702_v59 = vpop.permute.xlu0 %2081 }
 0x324   :  { %2215 = vrot.lane.b32.xlu2 %v2200_v37, %s2876_s15  ;;  %2213 = vrot.lane.b32.xlu0 %v2199_v52, %s2876_s15  ;;  %v3705_v27 = vpop.permute.xlu1 %2202 }
 0x32b   :  { %2075 = vrot.lane.b32.xlu1 %v2062_v23, %s2877_s16  ;;  %v3707_v62 = vpop.permute.xlu0 %2217 }
 0x32c   :  { %2209 = vrot.lane.b32.xlu2 %v2197_v6, %s2876_s15  ;;  %2349 = vrot.lane.b32.xlu0 %v2335_v48, %s2873_s13 }
 0x333   :  { %2211 = vrot.lane.b32.xlu1 %v2198_v34, %s2876_s15 }
 0x334   :  { %2351 = vrot.lane.b32.xlu2 %v2336_v45, %s2873_s13  ;;  %2485 = vrot.lane.b32.xlu0 %v2471_v42, %s2874_s14  ;;  %v3968_v45 = vperm.slane %v2942_v0, 4  ;;  %v3970_v0 = vperm.slane %v2966_v10, 4 }
 0x336   :  { %v1941_v42 = vmul.f32 %v3601_v51, %v3968_v45  ;;  %v1943_v51 = vmul.f32 %v3579_v3, %v3970_v0 }
 0x33b   :  { %2347 = vrot.lane.b32.xlu1 %v2334_v50, %s2873_s13  ;;  %v3971_v50 = vperm.slane %v2954_v4, 4 }
 0x33c   :  { %2345 = vrot.lane.b32.xlu2 %v2333_v25, %s2873_s13  ;;  %2489 = vrot.lane.b32.xlu0 %v2473_v49, %s2874_s14  ;;  %v1942_v49 = vmul.f32 %v3571_v30, %v3969_v2 }
 0x33d   :  { %v1944_v25 = vmul.f32 %v3588_v32, %v3971_v50 }
 0x343   :  { %2483 = vrot.lane.b32.xlu1 %v2470_v16, %s2874_s14 }
 0x344   :  { %2487 = vrot.lane.b32.xlu2 %v2472_v36, %s2874_s14 }
 0x346   :  { %v1572_v15 = vpop.permute.xlu2 %1571 }
 0x34c   :  { %2481 = vrot.lane.b32.xlu2 %v2469_v12, %s2874_s14 }
 0x34e   :  { %v1704_v40 = vpop.permute.xlu2 %1703 }
 0x356   :  { %v1838_v41 = vpop.permute.xlu2 %1837 }
 0x35d   :  { %v1460_v57 = vpop.permute.xlu1 %1459 }
 0x35e   :  { %v1842_v31 = vpop.permute.xlu2 %1841  ;;  %v1462_v20 = vpop.permute.xlu0 %1461 }
 0x35f   :  { %v1467_v47 = vsel %vm132_vm5, %v1460_v57, %v1462_v20 }
 0x360   :  { %2772 = vmatpush.msk.msrb.mxu2 %vm1326_vm11, %v1467_v47 }
 0x361   :  { %2773 = vmatmul.msk.f32.vlgmr.msrb.gmra.mxu2 %vm1469_vm15, %v3555_v28 }
 0x365   :  { %v1464_v55 = vpop.permute.xlu1 %1463 }
 0x366   :  { %v1468_v5 = vsel %vm132_vm5, %v1462_v20, %v1464_v55  ;;  %v1836_v58 = vpop.permute.xlu2 %1835  ;;  %v1570_v7 = vpop.permute.xlu0 %1569 }
 0x367   :  { %v1577_v26 = vsel %vm252_vm8, %v1570_v7, %v1572_v15  ;;  %2774 = vmatpush.msk.msrb.mxu3 %vm1326_vm11, %v1468_v5 }
 0x368   :  { %2780 = vmatpush.msk.msra.mxu2 %vm1326_vm11, %v1577_v26  ;;  %2775 = vmatmul.msk.f32.vlgmr.msrb.gmra.mxu3 %vm1469_vm15, %v3555_v28 }
 0x369   :  { %2781 = vmatmul.msk.f32.vlgmr.msra.gmra.mxu2 %vm1469_vm15, %v3412_v44 }
 0x36d   :  { %v1458_v56 = vpop.permute.xlu1 %1457 }
 0x36e   :  { %v1465_v21 = vsel %vm132_vm5, %v3557_v60, %v1458_v56  ;;  %v1466_v63 = vsel %vm132_vm5, %v1458_v56, %v1460_v57  ;;  %v2080_v11 = vpop.permute.xlu2 %2079  ;;  %v1702_v37 = vpop.permute.xlu0 %1701 }
 0x36f   :  { %v1709_v52 = vsel %vm400_vm9, %v1702_v37, %v1704_v40  ;;  %2768 = vmatpush.msk.msrb.mxu0 %vm1326_vm11, %v1465_v21  ;;  %2770 = vmatpush.msk.msrb.mxu1 %vm1326_vm11, %v1466_v63  ;;  %v2086_v1 = vsel %vm517_vm4, %v2080_v11, %v3702_v59 }
 0x370   :  { %2788 = vmatpush.msk.msrb.mxu2 %vm1326_vm11, %v1709_v52  ;;  %2769 = vmatmul.msk.f32.vlgmr.msrb.gmra.mxu0 %vm1469_vm15, %v3555_v28 }
 0x371   :  { %2771 = vmatmul.msk.f32.vlgmr.msrb.gmra.mxu1 %vm1469_vm15, %v3555_v28  ;;  %2789 = vmatmul.msk.f32.vlgmr.msrb.gmra.mxu2 %vm1469_vm15, %v3647_v39 }
 0x375   :  { %v1574_v60 = vpop.permute.xlu1 %1573 }
 0x376   :  { %v1578_v18 = vsel %vm252_vm8, %v1572_v15, %v1574_v60  ;;  %v3735_v53 = vpop.permute.xlu2 %2073  ;;  %v1706_v14 = vpop.permute.xlu0 %1705 }
 0x377   :  { %v1710_v23 = vsel %vm400_vm9, %v1704_v40, %v1706_v14  ;;  %2782 = vmatpush.msk.msra.mxu3 %vm1326_vm11, %v1578_v18 }
 0x378   :  { %2783 = vmatmul.msk.f32.vlgmr.msra.gmra.mxu3 %vm1469_vm15, %v3412_v44 }
 0x379   :  { %2790 = vmatpush.msk.msrb.mxu3 %vm1326_vm11, %v1710_v23  ;;  %v3870_v23 = vld [vmem:[%s3939_s1 + $0x28] sm:$0x3] }
 0x37d   :  { %v1568_v48 = vpop.permute.xlu1 %1567 }
 0x37e   :  { %v1575_v28 = vsel %vm252_vm8, %v3561_v54, %v1568_v48  ;;  %v1576_v6 = vsel %vm252_vm8, %v1568_v48, %v1570_v7  ;;  %v2216_v61 = vpop.permute.xlu2 %2215  ;;  %v1700_v43 = vpop.permute.xlu0 %1699  ;;  %v1843_v54 = vsel %vm552_vm10, %v1834_v13, %v1836_v58  ;;  %v2591_v48 = vsel %vm2589_vm0, %v3870_v23, 0.0 }
 0x37f   :  { %v1707_v35 = vsel %vm400_vm9, %v3662_v46, %v1700_v43  ;;  %v1708_v17 = vsel %vm400_vm9, %v1700_v43, %v1702_v37  ;;  %2776 = vmatpush.msk.msra.mxu0 %vm1326_vm11, %v1575_v28  ;;  %2778 = vmatpush.msk.msra.mxu1 %vm1326_vm11, %v1576_v6  ;;  %v1844_v46 = vsel %vm552_vm10, %v1836_v58, %v1838_v41  ;;  %v3876_v6 = vld [vmem:[%s3939_s1 + $0x30] sm:$0x3] }
 0x380   :  { %2777 = vmatmul.msk.f32.vlgmr.msra.gmra.mxu0 %vm1469_vm15, %v3412_v44  ;;  %2779 = vmatmul.msk.f32.vlgmr.msra.gmra.mxu1 %vm1469_vm15, %v3412_v44  ;;  %v2222_v3 = vsel %vm365_vm3, %v2216_v61, %v3707_v62 }
 0x381   :  { %2784 = vmatpush.msk.msrb.mxu0 %vm1326_vm11, %v1707_v35  ;;  %2786 = vmatpush.msk.msrb.mxu1 %vm1326_vm11, %v1708_v17 }
 0x382   :  { %2791 = vmatmul.msk.f32.vlgmr.msrb.gmra.mxu3 %vm1469_vm15, %v3647_v39 }
 0x383   :  { %2792 = vmatpush.msk.msra.mxu0 %vm1326_vm11, %v1843_v54  ;;  %2794 = vmatpush.msk.msra.mxu1 %vm1326_vm11, %v1844_v46  ;;  %v3882_v46 = vld [vmem:[%s3939_s1 + $0x38] sm:$0x3] }
 0x385   :  { %v1840_v33 = vpop.permute.xlu1 %1839 }
 0x386   :  { %v1845_v24 = vsel %vm552_vm10, %v1838_v41, %v1840_v33  ;;  %v1846_v44 = vsel %vm552_vm10, %v1840_v33, %v1842_v31  ;;  %v2354_v34 = vpop.permute.xlu0 %2353  ;;  %v2210_v19 = vpop.permute.xlu2 %2209  ;;  %v2595_v33 = vsel %vm2589_vm0, %v3882_v46, 0.0 }
 0x387   :  { %2796 = vmatpush.msk.msra.mxu2 %vm1326_vm11, %v1845_v24  ;;  %2798 = vmatpush.msk.msra.mxu3 %vm1326_vm11, %v1846_v44 }
 0x388   :  { %2785 = vmatmul.msk.f32.vlgmr.msrb.gmra.mxu0 %vm1469_vm15, %v3647_v39  ;;  %2787 = vmatmul.msk.f32.vlgmr.msrb.gmra.mxu1 %vm1469_vm15, %v3647_v39 }
 0x389   :  { %2797 = vmatmul.msk.f32.vlgmr.msra.gmra.mxu2 %vm1469_vm15, %v3684_v9  ;;  %2800 = vmatpush.msk.msrb.mxu0 %vm1326_vm11, %v1941_v42 }
 0x38a   :  { %2799 = vmatmul.msk.f32.vlgmr.msra.gmra.mxu3 %vm1469_vm15, %v3684_v9  ;;  %2802 = vmatpush.msk.msrb.mxu1 %vm1326_vm11, %v1942_v49 }
 0x38b   :  { %2804 = vmatpush.msk.msrb.mxu2 %vm1326_vm11, %v1943_v51  ;;  %2806 = vmatpush.msk.msrb.mxu3 %vm1326_vm11, %v1944_v25 }
 0x38d   :  { %2814 = vmatpush.msk.msra.mxu3 %vm1326_vm11, %v2086_v1  ;;  %v2339_v10 = vpop.permute.xlu1 %2338 }
 0x38e   :  { %v2078_v30 = vpop.permute.xlu0 %2077  ;;  %v2352_v32 = vpop.permute.xlu2 %2351 }
 0x38f   :  { %v2085_v4 = vsel %vm517_vm4, %v2078_v30, %v2080_v11 }
 0x390   :  { %2812 = vmatpush.msk.msra.mxu2 %vm1326_vm11, %v2085_v4  ;;  %2793 = vmatmul.msk.f32.vlgmr.msra.gmra.mxu0 %vm1469_vm15, %v3684_v9 }
 0x391   :  { %2795 = vmatmul.msk.f32.vlgmr.msra.gmra.mxu1 %vm1469_vm15, %v3684_v9  ;;  %2805 = vmatmul.msk.f32.vlgmr.msrb.gmra.mxu2 %vm1469_vm15, %v3693_v38  ;;  %v2358_v9 = vsel %vm96_vm1, %v2352_v32, %v2354_v34 }
 0x392   :  { %2807 = vmatmul.msk.f32.vlgmr.msrb.gmra.mxu3 %vm1469_vm15, %v3693_v38 }
 0x393   :  { %2822 = vmatpush.msk.msrb.mxu3 %vm1326_vm11, %v2222_v3 }
 0x395   :  { %v2475_v39 = vpop.permute.xlu1 %2474 }
 0x396   :  { %v2214_v8 = vpop.permute.xlu0 %2213  ;;  %v2346_v16 = vpop.permute.xlu2 %2345 }
 0x397   :  { %v2221_v22 = vsel %vm365_vm3, %v2214_v8, %v2216_v61  ;;  %v2593_v61 = vsel %vm2589_vm0, %v3876_v6, 0.0 }
 0x398   :  { %2820 = vmatpush.msk.msrb.mxu2 %vm1326_vm11, %v2221_v22  ;;  %2801 = vmatmul.msk.f32.vlgmr.msrb.gmra.mxu0 %vm1469_vm15, %v3693_v38 }
 0x399   :  { %2803 = vmatmul.msk.f32.vlgmr.msrb.gmra.mxu1 %vm1469_vm15, %v3693_v38  ;;  %2813 = vmatmul.msk.f32.vlgmr.msra.gmra.mxu2 %vm1469_vm15, %v3699_v29 }
 0x39a   :  { %2815 = vmatmul.msk.f32.vlgmr.msra.gmra.mxu3 %vm1469_vm15, %v3699_v29 }
 0x39b   :  { %2830 = vmatpush.msk.msra.mxu3 %vm1326_vm11, %v2358_v9 }
 0x39d   :  { %v2076_v13 = vpop.permute.xlu1 %2075 }
 0x39e   :  { %v2083_v36 = vsel %vm517_vm4, %v3735_v53, %v2076_v13  ;;  %v2084_v15 = vsel %vm517_vm4, %v2076_v13, %v2078_v30  ;;  %v2350_v12 = vpop.permute.xlu0 %2349  ;;  %v2488_v40 = vpop.permute.xlu2 %2487  ;;  %v3864_v53 = vld [vmem:[%s3939_s1 + $0x20] sm:$0x3] }
 0x39f   :  { %v2357_v38 = vsel %vm96_vm1, %v2350_v12, %v2352_v32  ;;  %2808 = vmatpush.msk.msra.mxu0 %vm1326_vm11, %v2083_v36  ;;  %2810 = vmatpush.msk.msra.mxu1 %vm1326_vm11, %v2084_v15  ;;  %v2590_v14 = vsel %vm2589_vm0, %v3864_v53, 0.0 }
 0x3a0   :  { %2828 = vmatpush.msk.msra.mxu2 %vm1326_vm11, %v2357_v38  ;;  %2809 = vmatmul.msk.f32.vlgmr.msra.gmra.mxu0 %vm1469_vm15, %v3699_v29  ;;  %v2592_v28 = vadd.f32 %v2591_v48, %v2590_v14 }
 0x3a1   :  { %2811 = vmatmul.msk.f32.vlgmr.msra.gmra.mxu1 %vm1469_vm15, %v3699_v29  ;;  %2821 = vmatmul.msk.f32.vlgmr.msrb.gmra.mxu2 %vm1469_vm15, %v3705_v27 }
 0x3a2   :  { %2823 = vmatmul.msk.f32.vlgmr.msrb.gmra.mxu3 %vm1469_vm15, %v3705_v27  ;;  %v2594_v35 = vadd.f32 %v2593_v61, %v2592_v28  ;;  %v2601_v28 = vperm.slane %v3876_v6, 1 }
 0x3a4   :  { %v2596_v44 = vadd.f32 %v2595_v33, %v2594_v35  ;;  %v2600_v35 = vperm.slane %v3870_v23, 1 }
 0x3a5   :  { %v2212_v59 = vpop.permute.xlu1 %2211 }
 0x3a6   :  { %v2219_v62 = vsel %vm365_vm3, %v2210_v19, %v2212_v59  ;;  %v2220_v41 = vsel %vm365_vm3, %v2212_v59, %v2214_v8  ;;  %v2486_v57 = vpop.permute.xlu0 %2485  ;;  %2597 = vadd.xlane.f32.xlu0 %v2596_v44 }
 0x3a7   :  { %v2493_v31 = vsel %vm68_vm2, %v2486_v57, %v2488_v40  ;;  %2816 = vmatpush.msk.msrb.mxu0 %vm1326_vm11, %v2219_v62  ;;  %2818 = vmatpush.msk.msrb.mxu1 %vm1326_vm11, %v2220_v41 }
 0x3a8   :  { %2836 = vmatpush.msk.msrb.mxu2 %vm1326_vm11, %v2493_v31  ;;  %2817 = vmatmul.msk.f32.vlgmr.msrb.gmra.mxu0 %vm1469_vm15, %v3705_v27 }
 0x3a9   :  { %2819 = vmatmul.msk.f32.vlgmr.msrb.gmra.mxu1 %vm1469_vm15, %v3705_v27  ;;  %2829 = vmatmul.msk.f32.vlgmr.msra.gmra.mxu2 %vm1469_vm15, %v2339_v10  ;;  %v2482_v27 = vpop.permute.xlu2 %2481 }
 0x3aa   :  { %2831 = vmatmul.msk.f32.vlgmr.msra.gmra.mxu3 %vm1469_vm15, %v2339_v10 }
 0x3ad   :  { %v2348_v29 = vpop.permute.xlu1 %2347 }
 0x3ae   :  { %v2355_v20 = vsel %vm96_vm1, %v2346_v16, %v2348_v29  ;;  %v2356_v47 = vsel %vm96_vm1, %v2348_v29, %v2350_v12  ;;  %v2490_v55 = vpop.permute.xlu0 %2489 }
 0x3af   :  { %v2494_v5 = vsel %vm68_vm2, %v2488_v40, %v2490_v55  ;;  %2824 = vmatpush.msk.msra.mxu0 %vm1326_vm11, %v2355_v20  ;;  %2826 = vmatpush.msk.msra.mxu1 %vm1326_vm11, %v2356_v47 }
 0x3b0   :  { %2838 = vmatpush.msk.msrb.mxu3 %vm1326_vm11, %v2494_v5  ;;  %2825 = vmatmul.msk.f32.vlgmr.msra.gmra.mxu0 %vm1469_vm15, %v2339_v10 }
 0x3b1   :  { %2827 = vmatmul.msk.f32.vlgmr.msra.gmra.mxu1 %vm1469_vm15, %v2339_v10  ;;  %2837 = vmatmul.msk.f32.vlgmr.msrb.gmra.mxu2 %vm1469_vm15, %v2475_v39 }
 0x3b2   :  { %2839 = vmatmul.msk.f32.vlgmr.msrb.gmra.mxu3 %vm1469_vm15, %v2475_v39 }
 0x3b5   :  { %v2484_v58 = vpop.permute.xlu1 %2483 }
 0x3b6   :  { %v2491_v7 = vsel %vm68_vm2, %v2482_v27, %v2484_v58  ;;  %v2492_v26 = vsel %vm68_vm2, %v2484_v58, %v2486_v57 }
 0x3b7   :  { %2832 = vmatpush.msk.msrb.mxu0 %vm1326_vm11, %v2491_v7  ;;  %2834 = vmatpush.msk.msrb.mxu1 %vm1326_vm11, %v2492_v26 }
 0x3b8   :  { %2833 = vmatmul.msk.f32.vlgmr.msrb.gmra.mxu0 %vm1469_vm15, %v2475_v39 }
 0x3b9   :  { %2835 = vmatmul.msk.f32.vlgmr.msrb.gmra.mxu1 %vm1469_vm15, %v2475_v39 }
 0x3e4   :  { %v1537_v56 = vpop.f32.mrf.mxu2 }
 0x3eb   :  { %v1557_v21 = vpop.f32.mrf.mxu3 }
 0x3ec   :  { %v1646_v37 = vpop.f32.mrf.mxu2 }
 0x3ed   :  { %v1497_v63 = vpop.f32.mrf.mxu0  ;;  %v1647_v39 = vadd.f32 %v1646_v37, %v1537_v56 }
 0x3ee   :  { %v1517_v11 = vpop.f32.mrf.mxu1 }
 0x3f4   :  { %v1778_v43 = vpop.f32.mrf.mxu2 }
 0x3f5   :  { %v1803_v9 = vadd.f32 %v1778_v43, %v1647_v39 }
 0x3fb   :  { %v1666_v52 = vpop.f32.mrf.mxu3 }
 0x3fc   :  { %v1667_v8 = vadd.f32 %v1666_v52, %v1557_v21 }
 0x3fd   :  { %v1606_v60 = vpop.f32.mrf.mxu0  ;;  %v1626_v18 = vpop.f32.mrf.mxu1 }
 0x3fe   :  { %v1607_v22 = vadd.f32 %v1606_v60, %v1497_v63  ;;  %v1627_v16 = vadd.f32 %v1626_v18, %v1517_v11  ;;  %v2599_v18 = vperm.slane %v3864_v53, 1  ;;  %v2602_v53 = vperm.slane %v3882_v46, 1 }
 0x405   :  { %v1798_v17 = vpop.f32.mrf.mxu3  ;;  %v1738_v54 = vpop.f32.mrf.mxu0 }
 0x406   :  { %v1758_v24 = vpop.f32.mrf.mxu1  ;;  %v1804_v13 = vadd.f32 %v1798_v17, %v1667_v8  ;;  %v1801_v36 = vadd.f32 %v1738_v54, %v1607_v22 }
 0x407   :  { %v1802_v15 = vadd.f32 %v1758_v24, %v1627_v16 }
 0x40c   :  { %v1914_v34 = vpop.f32.mrf.mxu2 }
 0x40d   :  { %v1934_v45 = vpop.f32.mrf.mxu3  ;;  %v1874_v42 = vpop.f32.mrf.mxu0  ;;  %v1939_v12 = vadd.f32 %v1914_v34, %v1803_v9 }
 0x40e   :  { %v1894_v19 = vpop.f32.mrf.mxu1  ;;  %v1940_v38 = vadd.f32 %v1934_v45, %v1804_v13  ;;  %v1937_v59 = vadd.f32 %v1874_v42, %v1801_v36  ;;  %v2678_v36 = vld [vmem:[%s3945_s7] sm:$0x3f] }
 0x40f   :  { %v1938_v62 = vadd.f32 %v1894_v19, %v1802_v15 }
 0x414   :  { %v2018_v2 = vpop.f32.mrf.mxu2 }
 0x415   :  { %v2038_v49 = vpop.f32.mrf.mxu3  ;;  %v1978_v0 = vpop.f32.mrf.mxu0  ;;  %v2043_v41 = vadd.f32 %v2018_v2, %v1939_v12 }
 0x416   :  { %v1998_v51 = vpop.f32.mrf.mxu1  ;;  %v2044_v29 = vadd.f32 %v2038_v49, %v1940_v38  ;;  %v2041_v20 = vadd.f32 %v1978_v0, %v1937_v59 }
 0x417   :  { %v2042_v55 = vadd.f32 %v1998_v51, %v1938_v62 }
 0x419   :  { %v2598_v15 = vpop.xlane.xlu0 %2597 }
 0x41a   :  { %v2616_v12 = vperm.slane %v2598_v15, 1 }
 0x41c   :  { %v2154_v50 = vpop.f32.mrf.mxu2  ;;  %2865 = vrcp.f32 %v2616_v12  ;;  %vm2622_vm1 = vweird.f32 %v2616_v12 }
 0x41d   :  { %v2174_v25 = vpop.f32.mrf.mxu3  ;;  %v2114_v1 = vpop.f32.mrf.mxu0  ;;  %v2179_v5 = vadd.f32 %v2154_v50, %v2043_v41  ;;  %v2628_v41 = vand.u32 2147483648, %v2616_v12 }
 0x41e   :  { %v2134_v10 = vpop.f32.mrf.mxu1  ;;  %v2180_v27 = vadd.f32 %v2174_v25, %v2044_v29  ;;  %v2177_v58 = vadd.f32 %v2114_v1, %v2041_v20 }
 0x41f   :  { %v2178_v7 = vadd.f32 %v2134_v10, %v2042_v55  ;;  %v2629_v29 = vor.u32 1.1754944e-38, %v2628_v41 }
 0x422   :  { %v2866_v38 = vpop.eup %2865 }
 0x423   :  { %v2618_v59 = vmul.f32 %v2866_v38, %v2616_v12  ;;  %vm2623_vm2 = vweird.f32 %v2866_v38 }
 0x424   :  { %v2290_v30 = vpop.f32.mrf.mxu2  ;;  %vm2624_vm3 = vmor %vm2622_vm1, %vm2623_vm2 }
 0x425   :  { %v2310_v4 = vpop.f32.mrf.mxu3  ;;  %v2250_v3 = vpop.f32.mrf.mxu0  ;;  %v2315_v26 = vadd.f32 %v2290_v30, %v2179_v5 }
 0x426   :  { %v2270_v32 = vpop.f32.mrf.mxu1  ;;  %v2316_v56 = vadd.f32 %v2310_v4, %v2180_v27  ;;  %v2313_v21 = vadd.f32 %v2250_v3, %v2177_v58 }
 0x427   :  { %v2314_v63 = vadd.f32 %v2270_v32, %v2178_v7 }
 0x42c   :  { %v2426_v40 = vpop.f32.mrf.mxu2 }
 0x42d   :  { %v2446_v57 = vpop.f32.mrf.mxu3  ;;  %v2386_v31 = vpop.f32.mrf.mxu0  ;;  %v2451_v11 = vadd.f32 %v2426_v40, %v2315_v26  ;;  %v2619_v40 = vsub.f32 1.0, %v2618_v59 }
 0x42e   :  { %v2406_v47 = vpop.f32.mrf.mxu1  ;;  %v2452_v37 = vadd.f32 %v2446_v57, %v2316_v56  ;;  %v2449_v52 = vadd.f32 %v2386_v31, %v2313_v21  ;;  %v2626_v31 = vand.u32 2147483647, %v2616_v12 }
 0x42f   :  { %v2450_v14 = vadd.f32 %v2406_v47, %v2314_v63  ;;  %v2620_v62 = vmul.f32 %v2866_v38, %v2619_v40 }
 0x430   :  { %vm2627_vm4 = vcmp.eq.f32.partialorder %v2626_v31, 8.507059e+37 }
 0x431   :  { %v2621_v57 = vadd.f32 %v2866_v38, %v2620_v62 }
 0x433   :  { %v2625_v20 = vsel %vm2624_vm3, %v2866_v38, %v2621_v57 }
 0x434   :  { %v2562_v60 = vpop.f32.mrf.mxu2  ;;  %v2630_v55 = vsel %vm2627_vm4, %v2629_v29, %v2625_v20 }
 0x435   :  { %v3886_v48 = vadd.f32 %v2562_v60, %v2451_v11  ;;  %v2582_v61 = vpop.f32.mrf.mxu3  ;;  %v2522_v43 = vpop.f32.mrf.mxu0 }
 0x436   :  { %v3890_v17 = vadd.f32 %v2582_v61, %v2452_v37  ;;  %v3892_v54 = vadd.f32 %v2522_v43, %v2449_v52  ;;  %v2542_v33 = vpop.f32.mrf.mxu1 }
 0x437   :  { %v2634_v24 = vmul.f32 %v3886_v48, %v3886_v48  ;;  %v3896_v44 = vadd.f32 %v2542_v33, %v2450_v14  ;;  %v2605_v45 = vmul.f32 %v2601_v28, %v3886_v48 }
 0x438   :  { %v2603_v34 = vmul.f32 %v2599_v18, %v3892_v54  ;;  %v2632_v6 = vmul.f32 %v3892_v54, %v3892_v54  ;;  %v2635_v23 = vmul.f32 %v3890_v17, %v3890_v17  ;;  %v2606_v46 = vmul.f32 %v2602_v53, %v3890_v17 }
 0x439   :  { %v2604_v42 = vmul.f32 %v2600_v35, %v3896_v44  ;;  %v2633_v19 = vmul.f32 %v3896_v44, %v3896_v44  ;;  %v2638_v50 = vmul.f32 %v2634_v24, %v2601_v28  ;;  %v2610_v10 = vsel %vm1326_vm11, %v2605_v45, 0.0 }
 0x43a   :  { %v2636_v2 = vmul.f32 %v2632_v6, %v2599_v18  ;;  %v2607_v49 = vsel %vm1326_vm11, %v2603_v34, 0.0  ;;  %v2639_v30 = vmul.f32 %v2635_v23, %v2602_v53  ;;  %v2612_v39 = vsel %vm1326_vm11, %v2606_v46, 0.0  ;;  %v2667_v18 = vld [vmem:[%s3946_s6] sm:$0x3f] }
 0x43b   :  { %v2637_v0 = vmul.f32 %v2633_v19, %v2600_v35  ;;  %v2608_v51 = vsel %vm1326_vm11, %v2604_v42, 0.0  ;;  %v2643_v8 = vsel %vm1326_vm11, %v2638_v50, 0.0 }
 0x43c   :  { %v2609_v25 = vadd.f32 %v2608_v51, %v2607_v49  ;;  %v2640_v1 = vsel %vm1326_vm11, %v2636_v2, 0.0  ;;  %v2645_v16 = vsel %vm1326_vm11, %v2639_v30, 0.0 }
 0x43d   :  { %v2641_v4 = vsel %vm1326_vm11, %v2637_v0, 0.0 }
 0x43e   :  { %v2611_v3 = vadd.f32 %v2610_v10, %v2609_v25  ;;  %v2642_v32 = vadd.f32 %v2641_v4, %v2640_v1 }
 0x440   :  { %v2613_v22 = vadd.f32 %v2612_v39, %v2611_v3  ;;  %v2644_v9 = vadd.f32 %v2643_v8, %v2642_v32 }
 0x442   :  { %2614 = vadd.xlane.f32.xlu2 %v2613_v22  ;;  %v2646_v13 = vadd.f32 %v2645_v16, %v2644_v9 }
 0x444   :  { %2647 = vadd.xlane.f32.xlu1 %v2646_v13 }
 0x45a   :  { %2681 = vperm.xlu2 %2861, %v2678_v36  }
 0x4b5   :  { %v2615_v47 = vpop.xlane.xlu2 %2614 }
 0x4b6   :  { %v2631_v5 = vmul.f32 %v2630_v55, %v2615_v47 }
 0x4b7   :  { %v2648_v27 = vpop.xlane.xlu1 %2647 }
 0x4b8   :  { %v2649_v58 = vmul.f32 %v2648_v27, %v2630_v55  ;;  %v2650_v7 = vmul.f32 %v2631_v5, %v2631_v5  ;;  %v2652_v61 = vsub.f32 %v3892_v54, %v2631_v5  ;;  %v2653_v43 = vsub.f32 %v3896_v44, %v2631_v5 }
 0x4b9   :  { %v2654_v35 = vsub.f32 %v3886_v48, %v2631_v5  ;;  %v2655_v33 = vsub.f32 %v3890_v17, %v2631_v5 }
 0x4ba   :  { %v2651_v26 = vsub.f32 %v2649_v58, %v2650_v7 }
 0x4bc   :  { %v2656_v56 = vadd.f32 1e-05, %v2651_v26 }
 0x4bd   :  { %v2682_v23 = vpop.permute.xlu2 %2681 }
 0x4be   :  { %2867 = vrsqrt.f32 %v2656_v56  ;;  %vm2663_vm6 = vweird.f32 %v2656_v56 }
 0x4c4   :  { %v2868_v21 = vpop.eup %2867 }
 0x4c5   :  { %v2658_v63 = vmul.f32 %v2868_v21, %v2656_v56  ;;  %vm2664_vm5 = vweird.f32 %v2868_v21 }
 0x4c6   :  { %vm2665_vm7 = vmor %vm2663_vm6, %vm2664_vm5 }
 0x4c7   :  { %v2659_v11 = vmul.f32 %v2868_v21, %v2658_v63 }
 0x4c9   :  { %v2660_v37 = vmul.f32 0.5, %v2659_v11 }
 0x4cb   :  { %v2661_v52 = vsub.f32 1.5, %v2660_v37 }
 0x4cd   :  { %v2662_v60 = vmul.f32 %v2868_v21, %v2661_v52 }
 0x4cf   :  { %v2666_v14 = vsel %vm2665_vm7, %v2868_v21, %v2662_v60 }
 0x4d0   :  { %v2668_v28 = vmul.f32 %v2667_v18, %v2666_v14 }
 0x4d2   :  { %2671 = vperm.xlu0 %2862, %v2668_v28  }
 0x544   :  { %v2672_v24 = vpop.permute.xlu0 %2671 }
 0x545   :  { %v2674_v53 = vmul.f32 %v2672_v24, %v2652_v61  ;;  %v2675_v34 = vmul.f32 %v2672_v24, %v2653_v43  ;;  %v2676_v6 = vmul.f32 %v2672_v24, %v2654_v35  ;;  %v2677_v45 = vmul.f32 %v2672_v24, %v2655_v33 }
 0x547   :  { %v2684_v42 = vadd.f32 %v2682_v23, %v2674_v53  ;;  %v2685_v19 = vadd.f32 %v2682_v23, %v2675_v34  ;;  %v2686_v2 = vadd.f32 %v2682_v23, %v2676_v6  ;;  %v2687_v49 = vadd.f32 %v2682_v23, %v2677_v45 }
 0x549   :  { %2688 = vst [vmem:[%s3947_s8] sm:$0x3f] %v2684_v42 }
 0x54a   :  { %2689 = vst [vmem:[%s3947_s8 + $0x8] sm:$0x3f] %v2685_v19 }
 0x54b   :  { %2690 = vst [vmem:[%s3947_s8 + $0x10] sm:$0x3f] %v2686_v2 }
 0x54c   :  { %2691 = vst [vmem:[%s3947_s8 + $0x18] sm:$0x3f] %v2687_v49 }

</bundles_post_ra>
